<compile_context>
chip_gen: v7x
topology: tpu7x:2x2x1
jax: 0.10.0
libtpu: 0.0.40
codegen_flags: <defaults>
</compile_context>

<pallas_src>
import functools
import math

import jax
import jax.numpy as jnp
from jax.experimental import pallas as pl
from jax.experimental.pallas import tpu as pltpu

LN_EPS = 1e-5  # torch.nn.LayerNorm default
_VMEM = pltpu.MemorySpace.VMEM


# ----------------------------- in-kernel helpers -----------------------------

def _mm(a, b):
    """MXU matmul: bf16 operands, fp32 accumulation.  `b` is already bf16."""
    return jnp.dot(a.astype(jnp.bfloat16), b, preferred_element_type=jnp.float32)


def _layernorm(x, gamma, beta):
    mean = jnp.mean(x, axis=-1, keepdims=True)
    cen = x - mean
    var = jnp.mean(cen * cen, axis=-1, keepdims=True)
    return cen * jax.lax.rsqrt(var + LN_EPS) * gamma + beta


def _softmax_last(x):
    m = jnp.max(x, axis=-1, keepdims=True)
    e = jnp.exp(x - m)
    return e * pl.reciprocal(jnp.sum(e, axis=-1, keepdims=True), approx=True)


def _mha(xq, xkv, wq, bq, wk, bk, wv, bv, wo, bo, *, H, dk):
    """Multi-head attention for one batch element.

    xq: (Sq, D) fp32, xkv: (Sk, D) fp32; W* are bf16, biases fp32.
    Q/K/V each use one fused lane-dense (D, H*dk) matmul; the score/softmax/
    context step runs as a single batched contraction over all H heads.
    """
    # 1/sqrt(dk) hoisted onto q once (instead of scaling every score block).
    q = (_mm(xq, wq) + bq) * (1.0 / math.sqrt(dk))      # (Sq, H*dk) fp32
    k = _mm(xkv, wk) + bk                               # (Sk, H*dk)
    v = _mm(xkv, wv) + bv                               # (Sk, H*dk)

    # Head-major (H, S, dk) views via static lane slices stacked along a new
    # leading axis (avoids a lane-splitting reshape at dk=8 << 128).
    qh = jnp.stack([q[:, h * dk:(h + 1) * dk] for h in range(H)], axis=0)
    kh = jnp.stack([k[:, h * dk:(h + 1) * dk] for h in range(H)], axis=0)
    vh = jnp.stack([v[:, h * dk:(h + 1) * dk] for h in range(H)], axis=0)

    s = jnp.einsum('hqd,hkd->hqk', qh, kh, preferred_element_type=jnp.float32)
    p = _softmax_last(s)                                 # (H, Sq, Sk) fp32
    ch = jnp.einsum('hqk,hkd->hqd', p, vh, preferred_element_type=jnp.float32)

    ctx = jnp.concatenate([ch[h] for h in range(H)], axis=-1)   # (Sq, H*dk)
    return _mm(ctx, wo) + bo                             # one lane-dense out proj


# --------------------------------- kernel ------------------------------------

def _decoder_layer_kernel(
        y_ref, mem_ref,
        sa_wq, sa_bq, sa_wk, sa_bk, sa_wv, sa_bv, sa_wo, sa_bo, sa_g, sa_beta,
        ca_wq, ca_bq, ca_wk, ca_bk, ca_wv, ca_bv, ca_wo, ca_bo, ca_g, ca_beta,
        ff_w1, ff_b1, ff_w2, ff_b2, ff_g, ff_beta,
        out_ref, *, H, dk):
    y = y_ref[0]       # (Sq, D) fp32 — this grid step's batch element
    mem = mem_ref[0]   # (Sk, D)

    # TODO(synk): training-mode Dropout(p=0.3) not implemented; eval-mode
    # (identity) semantics assumed, matching module.eval().

    # --- self-attention + residual + LayerNorm ---
    a = _mha(y, y, sa_wq[...], sa_bq[...], sa_wk[...], sa_bk[...],
             sa_wv[...], sa_bv[...], sa_wo[...], sa_bo[...], H=H, dk=dk)
    x1 = _layernorm(y + a, sa_g[...], sa_beta[...])

    # --- cross-attention over memory + residual + LayerNorm ---
    a = _mha(x1, mem, ca_wq[...], ca_bq[...], ca_wk[...], ca_bk[...],
             ca_wv[...], ca_bv[...], ca_wo[...], ca_bo[...], H=H, dk=dk)
    x2 = _layernorm(x1 + a, ca_g[...], ca_beta[...])

    # --- feed-forward + residual + LayerNorm ---
    h = jnp.maximum(_mm(x2, ff_w1[...]) + ff_b1[...], 0.0)
    f = _mm(h, ff_w2[...]) + ff_b2[...]
    out_ref[0] = _layernorm(x2 + f, ff_g[...], ff_beta[...])


# ------------------------------ pallas wrapper --------------------------------

_ATTN_ORDER = ('wq', 'bq', 'wk', 'bk', 'wv', 'bv', 'wo', 'bo', 'g', 'beta')
_FFN_ORDER = ('w1', 'b1', 'w2', 'b2', 'g', 'beta')
_MXU_WEIGHTS = frozenset(('wq', 'wk', 'wv', 'wo', 'w1', 'w2'))


def _flatten_params(params):
    flat = []
    for blk, order in (('sa', _ATTN_ORDER), ('ca', _ATTN_ORDER), ('ffn', _FFN_ORDER)):
        p = params[blk]
        for name in order:
            w = p[name]
            # bf16 for MXU operands (fp32 accumulation in-kernel); biases and
            # LayerNorm params stay fp32 (fp32 elementwise path on all gens).
            flat.append(w.astype(jnp.bfloat16) if name in _MXU_WEIGHTS else w)
    return flat


def decoder_layer_forward(y, memory, params, *, num_heads):
    B, Sq, D = y.shape
    Sk = memory.shape[1]
    Hdk = params['sa']['wq'].shape[1]
    dk = Hdk // num_heads

    flat = _flatten_params(params)

    def _whole_array_spec(shape):
        n = len(shape)
        return pl.BlockSpec(shape, lambda b, _n=n: (0,) * _n, memory_space=_VMEM)

    in_specs = [
        pl.BlockSpec((1, Sq, D), lambda b: (b, 0, 0), memory_space=_VMEM),
        pl.BlockSpec((1, Sk, D), lambda b: (b, 0, 0), memory_space=_VMEM),
    ] + [_whole_array_spec(w.shape) for w in flat]

    kernel = functools.partial(_decoder_layer_kernel, H=num_heads, dk=dk)

    # One fused pallas_call for the whole layer; grid over batch marked
    # "parallel" so v7x's two TensorCores each take part of the batch.
    # All weights stay whole-array VMEM-resident at this size; at realistic
    # D/F add a trailing "arbitrary" reduction grid axis with bf16 weight
    # tiles and raise vmem_limit_bytes (v5e/v6e scoped default 16/32 MiB).
    return pl.pallas_call(
        kernel,
        grid=(B,),
        in_specs=in_specs,
        out_specs=pl.BlockSpec((1, Sq, D), lambda b: (b, 0, 0), memory_space=_VMEM),
        out_shape=jax.ShapeDtypeStruct((B, Sq, D), jnp.float32),
        compiler_params=pltpu.CompilerParams(dimension_semantics=("parallel",)),
    )(y, memory, *flat)


# ------------------------------ params / reference ----------------------------

class _KeyGen:
    def __init__(self, key):
        self._key = key

    def __call__(self):
        self._key, sub = jax.random.split(self._key)
        return sub


def _linear_init(kg, fan_in, shape):
    bound = 1.0 / math.sqrt(fan_in)
    return jax.random.uniform(kg(), shape, jnp.float32, -bound, bound)


def _init_attn(kg, D, H, dk):
    Hdk = H * dk
    return dict(
        wq=_linear_init(kg, D, (D, Hdk)),   bq=_linear_init(kg, D, (1, Hdk)),
        wk=_linear_init(kg, D, (D, Hdk)),   bk=_linear_init(kg, D, (1, Hdk)),
        wv=_linear_init(kg, D, (D, Hdk)),   bv=_linear_init(kg, D, (1, Hdk)),
        wo=_linear_init(kg, Hdk, (Hdk, D)), bo=_linear_init(kg, Hdk, (1, D)),
        g=jnp.ones((1, D), jnp.float32),    beta=jnp.zeros((1, D), jnp.float32),
    )


def init_decoder_layer_params(key, D, H, F):
    dk = max(D // H, 1)
    kg = _KeyGen(key)
    return dict(
        sa=_init_attn(kg, D, H, dk),
        ca=_init_attn(kg, D, H, dk),
        ffn=dict(
            w1=_linear_init(kg, D, (D, F)), b1=_linear_init(kg, D, (1, F)),
            w2=_linear_init(kg, F, (F, D)), b2=_linear_init(kg, F, (1, D)),
            g=jnp.ones((1, D), jnp.float32), beta=jnp.zeros((1, D), jnp.float32),
        ),
    )


def _reference_forward(y, memory, params, *, num_heads):
    """Pure-JAX fp32 reference (mirrors the PyTorch module)."""
    def ln(x, g, b):
        mu = jnp.mean(x, axis=-1, keepdims=True)
        var = jnp.mean((x - mu) ** 2, axis=-1, keepdims=True)
        return (x - mu) / jnp.sqrt(var + LN_EPS) * g + b

    def mha(xq, xkv, p):
        Hdk = p['wq'].shape[1]
        dk = Hdk // num_heads
        B, Sq, _ = xq.shape
        Sk = xkv.shape[1]
        q = (xq @ p['wq'] + p['bq']).reshape(B, Sq, num_heads, dk)
        k = (xkv @ p['wk'] + p['bk']).reshape(B, Sk, num_heads, dk)
        v = (xkv @ p['wv'] + p['bv']).reshape(B, Sk, num_heads, dk)
        s = jnp.einsum('bqhd,bkhd->bhqk', q, k) / math.sqrt(dk)
        a = jax.nn.softmax(s, axis=-1)
        ctx = jnp.einsum('bhqk,bkhd->bqhd', a, v).reshape(B, Sq, Hdk)
        return ctx @ p['wo'] + p['bo']

    sa, ca, ff = params['sa'], params['ca'], params['ffn']
    x1 = ln(y + mha(y, y, sa), sa['g'], sa['beta'])
    x2 = ln(x1 + mha(x1, memory, ca), ca['g'], ca['beta'])
    h = jnp.maximum(x2 @ ff['w1'] + ff['b1'], 0.0)
    f = h @ ff['w2'] + ff['b2']
    return ln(x2 + f, ff['g'], ff['beta'])


# ----------------------------------- main -------------------------------------

if __name__ == "__main__":
    # small shapes consistent with the module (dim_mdl=32, 4 heads -> dk=8, dim_ff=64)
    B, S, D, H, F = 2, 8, 32, 4, 64
    key = jax.random.PRNGKey(0)
    k_y, k_m, k_p = jax.random.split(key, 3)
    y = jax.random.normal(k_y, (B, S, D), jnp.float32)
    memory = jax.random.normal(k_m, (B, S, D), jnp.float32)
    params = init_decoder_layer_params(k_p, D, H, F)

    out = decoder_layer_forward(y, memory, params, num_heads=H)
    out = jax.block_until_ready(out)

    ref = _reference_forward(y, memory, params, num_heads=H)
    assert out.shape == (B, S, D)
    assert bool(jnp.all(jnp.isfinite(out)))
    # bf16 matmul operands + approx softmax reciprocal vs fp32 reference:
    # a slightly looser tolerance than a pure-fp32 kernel would need.
    max_err = float(jnp.max(jnp.abs(out - ref)))
    assert bool(jnp.allclose(out, ref, rtol=3e-2, atol=3e-2)), max_err
    print("KERNEL_OK")
</pallas_src>

<mosaic_0001>
module attributes {stable_mosaic.version = 11 : i64} {
  func.func @_decoder_layer_kernel(%arg0: i32, %arg1: memref<1x8x32xf32, #tpu.memory_space<vmem>>, %arg2: memref<1x8x32xf32, #tpu.memory_space<vmem>>, %arg3: memref<32x32xbf16, #tpu.memory_space<vmem>>, %arg4: memref<1x32xf32, #tpu.memory_space<vmem>>, %arg5: memref<32x32xbf16, #tpu.memory_space<vmem>>, %arg6: memref<1x32xf32, #tpu.memory_space<vmem>>, %arg7: memref<32x32xbf16, #tpu.memory_space<vmem>>, %arg8: memref<1x32xf32, #tpu.memory_space<vmem>>, %arg9: memref<32x32xbf16, #tpu.memory_space<vmem>>, %arg10: memref<1x32xf32, #tpu.memory_space<vmem>>, %arg11: memref<1x32xf32, #tpu.memory_space<vmem>>, %arg12: memref<1x32xf32, #tpu.memory_space<vmem>>, %arg13: memref<32x32xbf16, #tpu.memory_space<vmem>>, %arg14: memref<1x32xf32, #tpu.memory_space<vmem>>, %arg15: memref<32x32xbf16, #tpu.memory_space<vmem>>, %arg16: memref<1x32xf32, #tpu.memory_space<vmem>>, %arg17: memref<32x32xbf16, #tpu.memory_space<vmem>>, %arg18: memref<1x32xf32, #tpu.memory_space<vmem>>, %arg19: memref<32x32xbf16, #tpu.memory_space<vmem>>, %arg20: memref<1x32xf32, #tpu.memory_space<vmem>>, %arg21: memref<1x32xf32, #tpu.memory_space<vmem>>, %arg22: memref<1x32xf32, #tpu.memory_space<vmem>>, %arg23: memref<32x64xbf16, #tpu.memory_space<vmem>>, %arg24: memref<1x64xf32, #tpu.memory_space<vmem>>, %arg25: memref<64x32xbf16, #tpu.memory_space<vmem>>, %arg26: memref<1x32xf32, #tpu.memory_space<vmem>>, %arg27: memref<1x32xf32, #tpu.memory_space<vmem>>, %arg28: memref<1x32xf32, #tpu.memory_space<vmem>>, %arg29: memref<1x8x32xf32, #tpu.memory_space<vmem>>) attributes {dimension_semantics = [#tpu.dimension_semantics<parallel>], iteration_bounds = array<i64: 2>, scalar_prefetch = 0 : i64, scratch_operands = 0 : i64, tpu.core_type = #tpu.core_type<tc>, window_params = [{transform_indices = @transform_0, window_bounds = array<i64: 1, 8, 32>}, {transform_indices = @transform_1, window_bounds = array<i64: 1, 8, 32>}, {pipeline_mode = #tpu.pipeline_mode<synchronous>, transform_indices = @transform_2, window_bounds = array<i64: 32, 32>}, {pipeline_mode = #tpu.pipeline_mode<synchronous>, transform_indices = @transform_3, window_bounds = array<i64: 1, 32>}, {pipeline_mode = #tpu.pipeline_mode<synchronous>, transform_indices = @transform_4, window_bounds = array<i64: 32, 32>}, {pipeline_mode = #tpu.pipeline_mode<synchronous>, transform_indices = @transform_5, window_bounds = array<i64: 1, 32>}, {pipeline_mode = #tpu.pipeline_mode<synchronous>, transform_indices = @transform_6, window_bounds = array<i64: 32, 32>}, {pipeline_mode = #tpu.pipeline_mode<synchronous>, transform_indices = @transform_7, window_bounds = array<i64: 1, 32>}, {pipeline_mode = #tpu.pipeline_mode<synchronous>, transform_indices = @transform_8, window_bounds = array<i64: 32, 32>}, {pipeline_mode = #tpu.pipeline_mode<synchronous>, transform_indices = @transform_9, window_bounds = array<i64: 1, 32>}, {pipeline_mode = #tpu.pipeline_mode<synchronous>, transform_indices = @transform_10, window_bounds = array<i64: 1, 32>}, {pipeline_mode = #tpu.pipeline_mode<synchronous>, transform_indices = @transform_11, window_bounds = array<i64: 1, 32>}, {pipeline_mode = #tpu.pipeline_mode<synchronous>, transform_indices = @transform_12, window_bounds = array<i64: 32, 32>}, {pipeline_mode = #tpu.pipeline_mode<synchronous>, transform_indices = @transform_13, window_bounds = array<i64: 1, 32>}, {pipeline_mode = #tpu.pipeline_mode<synchronous>, transform_indices = @transform_14, window_bounds = array<i64: 32, 32>}, {pipeline_mode = #tpu.pipeline_mode<synchronous>, transform_indices = @transform_15, window_bounds = array<i64: 1, 32>}, {pipeline_mode = #tpu.pipeline_mode<synchronous>, transform_indices = @transform_16, window_bounds = array<i64: 32, 32>}, {pipeline_mode = #tpu.pipeline_mode<synchronous>, transform_indices = @transform_17, window_bounds = array<i64: 1, 32>}, {pipeline_mode = #tpu.pipeline_mode<synchronous>, transform_indices = @transform_18, window_bounds = array<i64: 32, 32>}, {pipeline_mode = #tpu.pipeline_mode<synchronous>, transform_indices = @transform_19, window_bounds = array<i64: 1, 32>}, {pipeline_mode = #tpu.pipeline_mode<synchronous>, transform_indices = @transform_20, window_bounds = array<i64: 1, 32>}, {pipeline_mode = #tpu.pipeline_mode<synchronous>, transform_indices = @transform_21, window_bounds = array<i64: 1, 32>}, {pipeline_mode = #tpu.pipeline_mode<synchronous>, transform_indices = @transform_22, window_bounds = array<i64: 32, 64>}, {pipeline_mode = #tpu.pipeline_mode<synchronous>, transform_indices = @transform_23, window_bounds = array<i64: 1, 64>}, {pipeline_mode = #tpu.pipeline_mode<synchronous>, transform_indices = @transform_24, window_bounds = array<i64: 64, 32>}, {pipeline_mode = #tpu.pipeline_mode<synchronous>, transform_indices = @transform_25, window_bounds = array<i64: 1, 32>}, {pipeline_mode = #tpu.pipeline_mode<synchronous>, transform_indices = @transform_26, window_bounds = array<i64: 1, 32>}, {pipeline_mode = #tpu.pipeline_mode<synchronous>, transform_indices = @transform_27, window_bounds = array<i64: 1, 32>}, {transform_indices = @transform_28, window_bounds = array<i64: 1, 8, 32>}]} {
    %c0 = arith.constant 0 : index
    %c0_0 = arith.constant 0 : index
    %c0_1 = arith.constant 0 : index
    %0 = vector.load %arg1[%c0, %c0_0, %c0_1] : memref<1x8x32xf32, #tpu.memory_space<vmem>>, vector<1x8x32xf32>
    %1 = vector.shape_cast %0 : vector<1x8x32xf32> to vector<8x32xf32>
    %c0_2 = arith.constant 0 : index
    %c0_3 = arith.constant 0 : index
    %c0_4 = arith.constant 0 : index
    %2 = vector.load %arg2[%c0_2, %c0_3, %c0_4] : memref<1x8x32xf32, #tpu.memory_space<vmem>>, vector<1x8x32xf32>
    %3 = vector.shape_cast %2 : vector<1x8x32xf32> to vector<8x32xf32>
    %c0_5 = arith.constant 0 : index
    %c0_6 = arith.constant 0 : index
    %4 = vector.load %arg3[%c0_5, %c0_6] : memref<32x32xbf16, #tpu.memory_space<vmem>>, vector<32x32xbf16>
    %c0_7 = arith.constant 0 : index
    %c0_8 = arith.constant 0 : index
    %5 = vector.load %arg4[%c0_7, %c0_8] : memref<1x32xf32, #tpu.memory_space<vmem>>, vector<1x32xf32>
    %c0_9 = arith.constant 0 : index
    %c0_10 = arith.constant 0 : index
    %6 = vector.load %arg5[%c0_9, %c0_10] : memref<32x32xbf16, #tpu.memory_space<vmem>>, vector<32x32xbf16>
    %c0_11 = arith.constant 0 : index
    %c0_12 = arith.constant 0 : index
    %7 = vector.load %arg6[%c0_11, %c0_12] : memref<1x32xf32, #tpu.memory_space<vmem>>, vector<1x32xf32>
    %c0_13 = arith.constant 0 : index
    %c0_14 = arith.constant 0 : index
    %8 = vector.load %arg7[%c0_13, %c0_14] : memref<32x32xbf16, #tpu.memory_space<vmem>>, vector<32x32xbf16>
    %c0_15 = arith.constant 0 : index
    %c0_16 = arith.constant 0 : index
    %9 = vector.load %arg8[%c0_15, %c0_16] : memref<1x32xf32, #tpu.memory_space<vmem>>, vector<1x32xf32>
    %c0_17 = arith.constant 0 : index
    %c0_18 = arith.constant 0 : index
    %10 = vector.load %arg9[%c0_17, %c0_18] : memref<32x32xbf16, #tpu.memory_space<vmem>>, vector<32x32xbf16>
    %c0_19 = arith.constant 0 : index
    %c0_20 = arith.constant 0 : index
    %11 = vector.load %arg10[%c0_19, %c0_20] : memref<1x32xf32, #tpu.memory_space<vmem>>, vector<1x32xf32>
    %12 = arith.truncf %1 : vector<8x32xf32> to vector<8x32xbf16>
    %cst = arith.constant dense<0.000000e+00> : vector<8x32xf32>
    %13 = tpu.matmul %12, %4, %cst {dimension_numbers = #tpu.dot_dimension_numbers<[1], [0], [0], [1], [0, 0, 1, 1], [], []>} : vector<8x32xbf16>, vector<32x32xbf16>, vector<8x32xf32> -> vector<8x32xf32>
    %14 = vector.broadcast %5 : vector<1x32xf32> to vector<8x32xf32>
    %15 = arith.addf %13, %14 : vector<8x32xf32>
    %cst_21 = arith.constant 0.353553385 : f32
    %16 = vector.broadcast %cst_21 : f32 to vector<8x32xf32>
    %17 = arith.mulf %15, %16 : vector<8x32xf32>
    %18 = arith.truncf %1 : vector<8x32xf32> to vector<8x32xbf16>
    %cst_22 = arith.constant dense<0.000000e+00> : vector<8x32xf32>
    %19 = tpu.matmul %18, %6, %cst_22 {dimension_numbers = #tpu.dot_dimension_numbers<[1], [0], [0], [1], [0, 0, 1, 1], [], []>} : vector<8x32xbf16>, vector<32x32xbf16>, vector<8x32xf32> -> vector<8x32xf32>
    %20 = vector.broadcast %7 : vector<1x32xf32> to vector<8x32xf32>
    %21 = arith.addf %19, %20 : vector<8x32xf32>
    %22 = arith.truncf %1 : vector<8x32xf32> to vector<8x32xbf16>
    %cst_23 = arith.constant dense<0.000000e+00> : vector<8x32xf32>
    %23 = tpu.matmul %22, %8, %cst_23 {dimension_numbers = #tpu.dot_dimension_numbers<[1], [0], [0], [1], [0, 0, 1, 1], [], []>} : vector<8x32xbf16>, vector<32x32xbf16>, vector<8x32xf32> -> vector<8x32xf32>
    %24 = vector.broadcast %9 : vector<1x32xf32> to vector<8x32xf32>
    %25 = arith.addf %23, %24 : vector<8x32xf32>
    %26 = vector.extract_strided_slice %17 {offsets = [0, 0], sizes = [8, 8], strides = [1, 1]} : vector<8x32xf32> to vector<8x8xf32>
    %27 = vector.extract_strided_slice %17 {offsets = [0, 8], sizes = [8, 8], strides = [1, 1]} : vector<8x32xf32> to vector<8x8xf32>
    %28 = vector.extract_strided_slice %17 {offsets = [0, 16], sizes = [8, 8], strides = [1, 1]} : vector<8x32xf32> to vector<8x8xf32>
    %29 = vector.extract_strided_slice %17 {offsets = [0, 24], sizes = [8, 8], strides = [1, 1]} : vector<8x32xf32> to vector<8x8xf32>
    %30 = vector.shape_cast %26 : vector<8x8xf32> to vector<1x8x8xf32>
    %31 = vector.shape_cast %27 : vector<8x8xf32> to vector<1x8x8xf32>
    %32 = vector.shape_cast %28 : vector<8x8xf32> to vector<1x8x8xf32>
    %33 = vector.shape_cast %29 : vector<8x8xf32> to vector<1x8x8xf32>
    %34 = tpu.concatenate %30, %31, %32, %33 in 0 : vector<1x8x8xf32>, vector<1x8x8xf32>, vector<1x8x8xf32>, vector<1x8x8xf32> -> vector<4x8x8xf32>
    %35 = vector.extract_strided_slice %21 {offsets = [0, 0], sizes = [8, 8], strides = [1, 1]} : vector<8x32xf32> to vector<8x8xf32>
    %36 = vector.extract_strided_slice %21 {offsets = [0, 8], sizes = [8, 8], strides = [1, 1]} : vector<8x32xf32> to vector<8x8xf32>
    %37 = vector.extract_strided_slice %21 {offsets = [0, 16], sizes = [8, 8], strides = [1, 1]} : vector<8x32xf32> to vector<8x8xf32>
    %38 = vector.extract_strided_slice %21 {offsets = [0, 24], sizes = [8, 8], strides = [1, 1]} : vector<8x32xf32> to vector<8x8xf32>
    %39 = vector.shape_cast %35 : vector<8x8xf32> to vector<1x8x8xf32>
    %40 = vector.shape_cast %36 : vector<8x8xf32> to vector<1x8x8xf32>
    %41 = vector.shape_cast %37 : vector<8x8xf32> to vector<1x8x8xf32>
    %42 = vector.shape_cast %38 : vector<8x8xf32> to vector<1x8x8xf32>
    %43 = tpu.concatenate %39, %40, %41, %42 in 0 : vector<1x8x8xf32>, vector<1x8x8xf32>, vector<1x8x8xf32>, vector<1x8x8xf32> -> vector<4x8x8xf32>
    %44 = vector.extract_strided_slice %25 {offsets = [0, 0], sizes = [8, 8], strides = [1, 1]} : vector<8x32xf32> to vector<8x8xf32>
    %45 = vector.extract_strided_slice %25 {offsets = [0, 8], sizes = [8, 8], strides = [1, 1]} : vector<8x32xf32> to vector<8x8xf32>
    %46 = vector.extract_strided_slice %25 {offsets = [0, 16], sizes = [8, 8], strides = [1, 1]} : vector<8x32xf32> to vector<8x8xf32>
    %47 = vector.extract_strided_slice %25 {offsets = [0, 24], sizes = [8, 8], strides = [1, 1]} : vector<8x32xf32> to vector<8x8xf32>
    %48 = vector.shape_cast %44 : vector<8x8xf32> to vector<1x8x8xf32>
    %49 = vector.shape_cast %45 : vector<8x8xf32> to vector<1x8x8xf32>
    %50 = vector.shape_cast %46 : vector<8x8xf32> to vector<1x8x8xf32>
    %51 = vector.shape_cast %47 : vector<8x8xf32> to vector<1x8x8xf32>
    %52 = tpu.concatenate %48, %49, %50, %51 in 0 : vector<1x8x8xf32>, vector<1x8x8xf32>, vector<1x8x8xf32>, vector<1x8x8xf32> -> vector<4x8x8xf32>
    "tpu.trace_start"() <{level = 10 : i32, message = "hqd,hkd->hqk"}> : () -> ()
    %cst_24 = arith.constant dense<0.000000e+00> : vector<4x8x8xf32>
    %53 = tpu.matmul %34, %43, %cst_24 {dimension_numbers = #tpu.dot_dimension_numbers<[2], [2], [1], [1], [0, 0, 0, 1, 1, 1], [0], [0]>} : vector<4x8x8xf32>, vector<4x8x8xf32>, vector<4x8x8xf32> -> vector<4x8x8xf32>
    "tpu.trace_stop"() : () -> ()
    %cst_25 = arith.constant dense<0xFF800000> : vector<4x8xf32>
    %54 = vector.multi_reduction <maximumf>, %53, %cst_25 [2] : vector<4x8x8xf32> to vector<4x8xf32>
    %55 = vector.shape_cast %54 : vector<4x8xf32> to vector<4x8x1xf32>
    %56 = vector.broadcast %55 : vector<4x8x1xf32> to vector<4x8x8xf32>
    %57 = arith.subf %53, %56 : vector<4x8x8xf32>
    %58 = math.exp %57 : vector<4x8x8xf32>
    %cst_26 = arith.constant dense<0.000000e+00> : vector<4x8xf32>
    %59 = vector.multi_reduction <add>, %58, %cst_26 [2] : vector<4x8x8xf32> to vector<4x8xf32>
    %60 = vector.shape_cast %59 : vector<4x8xf32> to vector<4x8x1xf32>
    %61 = tpu.reciprocal %60 {approx = true} : vector<4x8x1xf32> -> vector<4x8x1xf32>
    %62 = vector.broadcast %61 : vector<4x8x1xf32> to vector<4x8x8xf32>
    %63 = arith.mulf %58, %62 : vector<4x8x8xf32>
    "tpu.trace_start"() <{level = 10 : i32, message = "hqk,hkd->hqd"}> : () -> ()
    %cst_27 = arith.constant dense<0.000000e+00> : vector<4x8x8xf32>
    %64 = tpu.matmul %63, %52, %cst_27 {dimension_numbers = #tpu.dot_dimension_numbers<[2], [1], [1], [2], [0, 0, 0, 1, 1, 2], [0], [0]>} : vector<4x8x8xf32>, vector<4x8x8xf32>, vector<4x8x8xf32> -> vector<4x8x8xf32>
    "tpu.trace_stop"() : () -> ()
    %65 = vector.extract_strided_slice %64 {offsets = [0, 0, 0], sizes = [1, 8, 8], strides = [1, 1, 1]} : vector<4x8x8xf32> to vector<1x8x8xf32>
    %66 = vector.shape_cast %65 : vector<1x8x8xf32> to vector<8x8xf32>
    %67 = vector.extract_strided_slice %64 {offsets = [1, 0, 0], sizes = [1, 8, 8], strides = [1, 1, 1]} : vector<4x8x8xf32> to vector<1x8x8xf32>
    %68 = vector.shape_cast %67 : vector<1x8x8xf32> to vector<8x8xf32>
    %69 = vector.extract_strided_slice %64 {offsets = [2, 0, 0], sizes = [1, 8, 8], strides = [1, 1, 1]} : vector<4x8x8xf32> to vector<1x8x8xf32>
    %70 = vector.shape_cast %69 : vector<1x8x8xf32> to vector<8x8xf32>
    %71 = vector.extract_strided_slice %64 {offsets = [3, 0, 0], sizes = [1, 8, 8], strides = [1, 1, 1]} : vector<4x8x8xf32> to vector<1x8x8xf32>
    %72 = vector.shape_cast %71 : vector<1x8x8xf32> to vector<8x8xf32>
    %73 = tpu.concatenate %66, %68, %70, %72 in 1 : vector<8x8xf32>, vector<8x8xf32>, vector<8x8xf32>, vector<8x8xf32> -> vector<8x32xf32>
    %74 = arith.truncf %73 : vector<8x32xf32> to vector<8x32xbf16>
    %cst_28 = arith.constant dense<0.000000e+00> : vector<8x32xf32>
    %75 = tpu.matmul %74, %10, %cst_28 {dimension_numbers = #tpu.dot_dimension_numbers<[1], [0], [0], [1], [0, 0, 1, 1], [], []>} : vector<8x32xbf16>, vector<32x32xbf16>, vector<8x32xf32> -> vector<8x32xf32>
    %76 = vector.broadcast %11 : vector<1x32xf32> to vector<8x32xf32>
    %77 = arith.addf %75, %76 : vector<8x32xf32>
    %78 = arith.addf %1, %77 : vector<8x32xf32>
    %c0_29 = arith.constant 0 : index
    %c0_30 = arith.constant 0 : index
    %79 = vector.load %arg11[%c0_29, %c0_30] : memref<1x32xf32, #tpu.memory_space<vmem>>, vector<1x32xf32>
    %c0_31 = arith.constant 0 : index
    %c0_32 = arith.constant 0 : index
    %80 = vector.load %arg12[%c0_31, %c0_32] : memref<1x32xf32, #tpu.memory_space<vmem>>, vector<1x32xf32>
    %cst_33 = arith.constant dense<0.000000e+00> : vector<8xf32>
    %81 = vector.multi_reduction <add>, %78, %cst_33 [1] : vector<8x32xf32> to vector<8xf32>
    %82 = vector.shape_cast %81 : vector<8xf32> to vector<8x1xf32>
    %cst_34 = arith.constant 3.200000e+01 : f32
    %83 = vector.broadcast %cst_34 : f32 to vector<8x1xf32>
    %84 = arith.divf %82, %83 : vector<8x1xf32>
    %85 = vector.broadcast %84 : vector<8x1xf32> to vector<8x32xf32>
    %86 = arith.subf %78, %85 : vector<8x32xf32>
    %87 = arith.mulf %86, %86 : vector<8x32xf32>
    %cst_35 = arith.constant dense<0.000000e+00> : vector<8xf32>
    %88 = vector.multi_reduction <add>, %87, %cst_35 [1] : vector<8x32xf32> to vector<8xf32>
    %89 = vector.shape_cast %88 : vector<8xf32> to vector<8x1xf32>
    %cst_36 = arith.constant 3.200000e+01 : f32
    %90 = vector.broadcast %cst_36 : f32 to vector<8x1xf32>
    %91 = arith.divf %89, %90 : vector<8x1xf32>
    %cst_37 = arith.constant 9.99999974E-6 : f32
    %92 = vector.broadcast %cst_37 : f32 to vector<8x1xf32>
    %93 = arith.addf %91, %92 : vector<8x1xf32>
    %94 = math.rsqrt %93 : vector<8x1xf32>
    %95 = vector.broadcast %94 : vector<8x1xf32> to vector<8x32xf32>
    %96 = arith.mulf %86, %95 : vector<8x32xf32>
    %97 = vector.broadcast %79 : vector<1x32xf32> to vector<8x32xf32>
    %98 = arith.mulf %96, %97 : vector<8x32xf32>
    %99 = vector.broadcast %80 : vector<1x32xf32> to vector<8x32xf32>
    %100 = arith.addf %98, %99 : vector<8x32xf32>
    %c0_38 = arith.constant 0 : index
    %c0_39 = arith.constant 0 : index
    %101 = vector.load %arg13[%c0_38, %c0_39] : memref<32x32xbf16, #tpu.memory_space<vmem>>, vector<32x32xbf16>
    %c0_40 = arith.constant 0 : index
    %c0_41 = arith.constant 0 : index
    %102 = vector.load %arg14[%c0_40, %c0_41] : memref<1x32xf32, #tpu.memory_space<vmem>>, vector<1x32xf32>
    %c0_42 = arith.constant 0 : index
    %c0_43 = arith.constant 0 : index
    %103 = vector.load %arg15[%c0_42, %c0_43] : memref<32x32xbf16, #tpu.memory_space<vmem>>, vector<32x32xbf16>
    %c0_44 = arith.constant 0 : index
    %c0_45 = arith.constant 0 : index
    %104 = vector.load %arg16[%c0_44, %c0_45] : memref<1x32xf32, #tpu.memory_space<vmem>>, vector<1x32xf32>
    %c0_46 = arith.constant 0 : index
    %c0_47 = arith.constant 0 : index
    %105 = vector.load %arg17[%c0_46, %c0_47] : memref<32x32xbf16, #tpu.memory_space<vmem>>, vector<32x32xbf16>
    %c0_48 = arith.constant 0 : index
    %c0_49 = arith.constant 0 : index
    %106 = vector.load %arg18[%c0_48, %c0_49] : memref<1x32xf32, #tpu.memory_space<vmem>>, vector<1x32xf32>
    %c0_50 = arith.constant 0 : index
    %c0_51 = arith.constant 0 : index
    %107 = vector.load %arg19[%c0_50, %c0_51] : memref<32x32xbf16, #tpu.memory_space<vmem>>, vector<32x32xbf16>
    %c0_52 = arith.constant 0 : index
    %c0_53 = arith.constant 0 : index
    %108 = vector.load %arg20[%c0_52, %c0_53] : memref<1x32xf32, #tpu.memory_space<vmem>>, vector<1x32xf32>
    %109 = arith.truncf %100 : vector<8x32xf32> to vector<8x32xbf16>
    %cst_54 = arith.constant dense<0.000000e+00> : vector<8x32xf32>
    %110 = tpu.matmul %109, %101, %cst_54 {dimension_numbers = #tpu.dot_dimension_numbers<[1], [0], [0], [1], [0, 0, 1, 1], [], []>} : vector<8x32xbf16>, vector<32x32xbf16>, vector<8x32xf32> -> vector<8x32xf32>
    %111 = vector.broadcast %102 : vector<1x32xf32> to vector<8x32xf32>
    %112 = arith.addf %110, %111 : vector<8x32xf32>
    %cst_55 = arith.constant 0.353553385 : f32
    %113 = vector.broadcast %cst_55 : f32 to vector<8x32xf32>
    %114 = arith.mulf %112, %113 : vector<8x32xf32>
    %115 = arith.truncf %3 : vector<8x32xf32> to vector<8x32xbf16>
    %cst_56 = arith.constant dense<0.000000e+00> : vector<8x32xf32>
    %116 = tpu.matmul %115, %103, %cst_56 {dimension_numbers = #tpu.dot_dimension_numbers<[1], [0], [0], [1], [0, 0, 1, 1], [], []>} : vector<8x32xbf16>, vector<32x32xbf16>, vector<8x32xf32> -> vector<8x32xf32>
    %117 = vector.broadcast %104 : vector<1x32xf32> to vector<8x32xf32>
    %118 = arith.addf %116, %117 : vector<8x32xf32>
    %119 = arith.truncf %3 : vector<8x32xf32> to vector<8x32xbf16>
    %cst_57 = arith.constant dense<0.000000e+00> : vector<8x32xf32>
    %120 = tpu.matmul %119, %105, %cst_57 {dimension_numbers = #tpu.dot_dimension_numbers<[1], [0], [0], [1], [0, 0, 1, 1], [], []>} : vector<8x32xbf16>, vector<32x32xbf16>, vector<8x32xf32> -> vector<8x32xf32>
    %121 = vector.broadcast %106 : vector<1x32xf32> to vector<8x32xf32>
    %122 = arith.addf %120, %121 : vector<8x32xf32>
    %123 = vector.extract_strided_slice %114 {offsets = [0, 0], sizes = [8, 8], strides = [1, 1]} : vector<8x32xf32> to vector<8x8xf32>
    %124 = vector.extract_strided_slice %114 {offsets = [0, 8], sizes = [8, 8], strides = [1, 1]} : vector<8x32xf32> to vector<8x8xf32>
    %125 = vector.extract_strided_slice %114 {offsets = [0, 16], sizes = [8, 8], strides = [1, 1]} : vector<8x32xf32> to vector<8x8xf32>
    %126 = vector.extract_strided_slice %114 {offsets = [0, 24], sizes = [8, 8], strides = [1, 1]} : vector<8x32xf32> to vector<8x8xf32>
    %127 = vector.shape_cast %123 : vector<8x8xf32> to vector<1x8x8xf32>
    %128 = vector.shape_cast %124 : vector<8x8xf32> to vector<1x8x8xf32>
    %129 = vector.shape_cast %125 : vector<8x8xf32> to vector<1x8x8xf32>
    %130 = vector.shape_cast %126 : vector<8x8xf32> to vector<1x8x8xf32>
    %131 = tpu.concatenate %127, %128, %129, %130 in 0 : vector<1x8x8xf32>, vector<1x8x8xf32>, vector<1x8x8xf32>, vector<1x8x8xf32> -> vector<4x8x8xf32>
    %132 = vector.extract_strided_slice %118 {offsets = [0, 0], sizes = [8, 8], strides = [1, 1]} : vector<8x32xf32> to vector<8x8xf32>
    %133 = vector.extract_strided_slice %118 {offsets = [0, 8], sizes = [8, 8], strides = [1, 1]} : vector<8x32xf32> to vector<8x8xf32>
    %134 = vector.extract_strided_slice %118 {offsets = [0, 16], sizes = [8, 8], strides = [1, 1]} : vector<8x32xf32> to vector<8x8xf32>
    %135 = vector.extract_strided_slice %118 {offsets = [0, 24], sizes = [8, 8], strides = [1, 1]} : vector<8x32xf32> to vector<8x8xf32>
    %136 = vector.shape_cast %132 : vector<8x8xf32> to vector<1x8x8xf32>
    %137 = vector.shape_cast %133 : vector<8x8xf32> to vector<1x8x8xf32>
    %138 = vector.shape_cast %134 : vector<8x8xf32> to vector<1x8x8xf32>
    %139 = vector.shape_cast %135 : vector<8x8xf32> to vector<1x8x8xf32>
    %140 = tpu.concatenate %136, %137, %138, %139 in 0 : vector<1x8x8xf32>, vector<1x8x8xf32>, vector<1x8x8xf32>, vector<1x8x8xf32> -> vector<4x8x8xf32>
    %141 = vector.extract_strided_slice %122 {offsets = [0, 0], sizes = [8, 8], strides = [1, 1]} : vector<8x32xf32> to vector<8x8xf32>
    %142 = vector.extract_strided_slice %122 {offsets = [0, 8], sizes = [8, 8], strides = [1, 1]} : vector<8x32xf32> to vector<8x8xf32>
    %143 = vector.extract_strided_slice %122 {offsets = [0, 16], sizes = [8, 8], strides = [1, 1]} : vector<8x32xf32> to vector<8x8xf32>
    %144 = vector.extract_strided_slice %122 {offsets = [0, 24], sizes = [8, 8], strides = [1, 1]} : vector<8x32xf32> to vector<8x8xf32>
    %145 = vector.shape_cast %141 : vector<8x8xf32> to vector<1x8x8xf32>
    %146 = vector.shape_cast %142 : vector<8x8xf32> to vector<1x8x8xf32>
    %147 = vector.shape_cast %143 : vector<8x8xf32> to vector<1x8x8xf32>
    %148 = vector.shape_cast %144 : vector<8x8xf32> to vector<1x8x8xf32>
    %149 = tpu.concatenate %145, %146, %147, %148 in 0 : vector<1x8x8xf32>, vector<1x8x8xf32>, vector<1x8x8xf32>, vector<1x8x8xf32> -> vector<4x8x8xf32>
    "tpu.trace_start"() <{level = 10 : i32, message = "hqd,hkd->hqk"}> : () -> ()
    %cst_58 = arith.constant dense<0.000000e+00> : vector<4x8x8xf32>
    %150 = tpu.matmul %131, %140, %cst_58 {dimension_numbers = #tpu.dot_dimension_numbers<[2], [2], [1], [1], [0, 0, 0, 1, 1, 1], [0], [0]>} : vector<4x8x8xf32>, vector<4x8x8xf32>, vector<4x8x8xf32> -> vector<4x8x8xf32>
    "tpu.trace_stop"() : () -> ()
    %cst_59 = arith.constant dense<0xFF800000> : vector<4x8xf32>
    %151 = vector.multi_reduction <maximumf>, %150, %cst_59 [2] : vector<4x8x8xf32> to vector<4x8xf32>
    %152 = vector.shape_cast %151 : vector<4x8xf32> to vector<4x8x1xf32>
    %153 = vector.broadcast %152 : vector<4x8x1xf32> to vector<4x8x8xf32>
    %154 = arith.subf %150, %153 : vector<4x8x8xf32>
    %155 = math.exp %154 : vector<4x8x8xf32>
    %cst_60 = arith.constant dense<0.000000e+00> : vector<4x8xf32>
    %156 = vector.multi_reduction <add>, %155, %cst_60 [2] : vector<4x8x8xf32> to vector<4x8xf32>
    %157 = vector.shape_cast %156 : vector<4x8xf32> to vector<4x8x1xf32>
    %158 = tpu.reciprocal %157 {approx = true} : vector<4x8x1xf32> -> vector<4x8x1xf32>
    %159 = vector.broadcast %158 : vector<4x8x1xf32> to vector<4x8x8xf32>
    %160 = arith.mulf %155, %159 : vector<4x8x8xf32>
    "tpu.trace_start"() <{level = 10 : i32, message = "hqk,hkd->hqd"}> : () -> ()
    %cst_61 = arith.constant dense<0.000000e+00> : vector<4x8x8xf32>
    %161 = tpu.matmul %160, %149, %cst_61 {dimension_numbers = #tpu.dot_dimension_numbers<[2], [1], [1], [2], [0, 0, 0, 1, 1, 2], [0], [0]>} : vector<4x8x8xf32>, vector<4x8x8xf32>, vector<4x8x8xf32> -> vector<4x8x8xf32>
    "tpu.trace_stop"() : () -> ()
    %162 = vector.extract_strided_slice %161 {offsets = [0, 0, 0], sizes = [1, 8, 8], strides = [1, 1, 1]} : vector<4x8x8xf32> to vector<1x8x8xf32>
    %163 = vector.shape_cast %162 : vector<1x8x8xf32> to vector<8x8xf32>
    %164 = vector.extract_strided_slice %161 {offsets = [1, 0, 0], sizes = [1, 8, 8], strides = [1, 1, 1]} : vector<4x8x8xf32> to vector<1x8x8xf32>
    %165 = vector.shape_cast %164 : vector<1x8x8xf32> to vector<8x8xf32>
    %166 = vector.extract_strided_slice %161 {offsets = [2, 0, 0], sizes = [1, 8, 8], strides = [1, 1, 1]} : vector<4x8x8xf32> to vector<1x8x8xf32>
    %167 = vector.shape_cast %166 : vector<1x8x8xf32> to vector<8x8xf32>
    %168 = vector.extract_strided_slice %161 {offsets = [3, 0, 0], sizes = [1, 8, 8], strides = [1, 1, 1]} : vector<4x8x8xf32> to vector<1x8x8xf32>
    %169 = vector.shape_cast %168 : vector<1x8x8xf32> to vector<8x8xf32>
    %170 = tpu.concatenate %163, %165, %167, %169 in 1 : vector<8x8xf32>, vector<8x8xf32>, vector<8x8xf32>, vector<8x8xf32> -> vector<8x32xf32>
    %171 = arith.truncf %170 : vector<8x32xf32> to vector<8x32xbf16>
    %cst_62 = arith.constant dense<0.000000e+00> : vector<8x32xf32>
    %172 = tpu.matmul %171, %107, %cst_62 {dimension_numbers = #tpu.dot_dimension_numbers<[1], [0], [0], [1], [0, 0, 1, 1], [], []>} : vector<8x32xbf16>, vector<32x32xbf16>, vector<8x32xf32> -> vector<8x32xf32>
    %173 = vector.broadcast %108 : vector<1x32xf32> to vector<8x32xf32>
    %174 = arith.addf %172, %173 : vector<8x32xf32>
    %175 = arith.addf %100, %174 : vector<8x32xf32>
    %c0_63 = arith.constant 0 : index
    %c0_64 = arith.constant 0 : index
    %176 = vector.load %arg21[%c0_63, %c0_64] : memref<1x32xf32, #tpu.memory_space<vmem>>, vector<1x32xf32>
    %c0_65 = arith.constant 0 : index
    %c0_66 = arith.constant 0 : index
    %177 = vector.load %arg22[%c0_65, %c0_66] : memref<1x32xf32, #tpu.memory_space<vmem>>, vector<1x32xf32>
    %cst_67 = arith.constant dense<0.000000e+00> : vector<8xf32>
    %178 = vector.multi_reduction <add>, %175, %cst_67 [1] : vector<8x32xf32> to vector<8xf32>
    %179 = vector.shape_cast %178 : vector<8xf32> to vector<8x1xf32>
    %cst_68 = arith.constant 3.200000e+01 : f32
    %180 = vector.broadcast %cst_68 : f32 to vector<8x1xf32>
    %181 = arith.divf %179, %180 : vector<8x1xf32>
    %182 = vector.broadcast %181 : vector<8x1xf32> to vector<8x32xf32>
    %183 = arith.subf %175, %182 : vector<8x32xf32>
    %184 = arith.mulf %183, %183 : vector<8x32xf32>
    %cst_69 = arith.constant dense<0.000000e+00> : vector<8xf32>
    %185 = vector.multi_reduction <add>, %184, %cst_69 [1] : vector<8x32xf32> to vector<8xf32>
    %186 = vector.shape_cast %185 : vector<8xf32> to vector<8x1xf32>
    %cst_70 = arith.constant 3.200000e+01 : f32
    %187 = vector.broadcast %cst_70 : f32 to vector<8x1xf32>
    %188 = arith.divf %186, %187 : vector<8x1xf32>
    %cst_71 = arith.constant 9.99999974E-6 : f32
    %189 = vector.broadcast %cst_71 : f32 to vector<8x1xf32>
    %190 = arith.addf %188, %189 : vector<8x1xf32>
    %191 = math.rsqrt %190 : vector<8x1xf32>
    %192 = vector.broadcast %191 : vector<8x1xf32> to vector<8x32xf32>
    %193 = arith.mulf %183, %192 : vector<8x32xf32>
    %194 = vector.broadcast %176 : vector<1x32xf32> to vector<8x32xf32>
    %195 = arith.mulf %193, %194 : vector<8x32xf32>
    %196 = vector.broadcast %177 : vector<1x32xf32> to vector<8x32xf32>
    %197 = arith.addf %195, %196 : vector<8x32xf32>
    %c0_72 = arith.constant 0 : index
    %c0_73 = arith.constant 0 : index
    %198 = vector.load %arg23[%c0_72, %c0_73] : memref<32x64xbf16, #tpu.memory_space<vmem>>, vector<32x64xbf16>
    %199 = arith.truncf %197 : vector<8x32xf32> to vector<8x32xbf16>
    %cst_74 = arith.constant dense<0.000000e+00> : vector<8x64xf32>
    %200 = tpu.matmul %199, %198, %cst_74 {dimension_numbers = #tpu.dot_dimension_numbers<[1], [0], [0], [1], [0, 0, 1, 1], [], []>} : vector<8x32xbf16>, vector<32x64xbf16>, vector<8x64xf32> -> vector<8x64xf32>
    %c0_75 = arith.constant 0 : index
    %c0_76 = arith.constant 0 : index
    %201 = vector.load %arg24[%c0_75, %c0_76] : memref<1x64xf32, #tpu.memory_space<vmem>>, vector<1x64xf32>
    %202 = vector.broadcast %201 : vector<1x64xf32> to vector<8x64xf32>
    %203 = arith.addf %200, %202 : vector<8x64xf32>
    %cst_77 = arith.constant 0.000000e+00 : f32
    %204 = vector.broadcast %cst_77 : f32 to vector<8x64xf32>
    %205 = arith.maximumf %203, %204 : vector<8x64xf32>
    %c0_78 = arith.constant 0 : index
    %c0_79 = arith.constant 0 : index
    %206 = vector.load %arg25[%c0_78, %c0_79] : memref<64x32xbf16, #tpu.memory_space<vmem>>, vector<64x32xbf16>
    %207 = arith.truncf %205 : vector<8x64xf32> to vector<8x64xbf16>
    %cst_80 = arith.constant dense<0.000000e+00> : vector<8x32xf32>
    %208 = tpu.matmul %207, %206, %cst_80 {dimension_numbers = #tpu.dot_dimension_numbers<[1], [0], [0], [1], [0, 0, 1, 1], [], []>} : vector<8x64xbf16>, vector<64x32xbf16>, vector<8x32xf32> -> vector<8x32xf32>
    %c0_81 = arith.constant 0 : index
    %c0_82 = arith.constant 0 : index
    %209 = vector.load %arg26[%c0_81, %c0_82] : memref<1x32xf32, #tpu.memory_space<vmem>>, vector<1x32xf32>
    %210 = vector.broadcast %209 : vector<1x32xf32> to vector<8x32xf32>
    %211 = arith.addf %208, %210 : vector<8x32xf32>
    %212 = arith.addf %197, %211 : vector<8x32xf32>
    %c0_83 = arith.constant 0 : index
    %c0_84 = arith.constant 0 : index
    %213 = vector.load %arg27[%c0_83, %c0_84] : memref<1x32xf32, #tpu.memory_space<vmem>>, vector<1x32xf32>
    %c0_85 = arith.constant 0 : index
    %c0_86 = arith.constant 0 : index
    %214 = vector.load %arg28[%c0_85, %c0_86] : memref<1x32xf32, #tpu.memory_space<vmem>>, vector<1x32xf32>
    %cst_87 = arith.constant dense<0.000000e+00> : vector<8xf32>
    %215 = vector.multi_reduction <add>, %212, %cst_87 [1] : vector<8x32xf32> to vector<8xf32>
    %216 = vector.shape_cast %215 : vector<8xf32> to vector<8x1xf32>
    %cst_88 = arith.constant 3.200000e+01 : f32
    %217 = vector.broadcast %cst_88 : f32 to vector<8x1xf32>
    %218 = arith.divf %216, %217 : vector<8x1xf32>
    %219 = vector.broadcast %218 : vector<8x1xf32> to vector<8x32xf32>
    %220 = arith.subf %212, %219 : vector<8x32xf32>
    %221 = arith.mulf %220, %220 : vector<8x32xf32>
    %cst_89 = arith.constant dense<0.000000e+00> : vector<8xf32>
    %222 = vector.multi_reduction <add>, %221, %cst_89 [1] : vector<8x32xf32> to vector<8xf32>
    %223 = vector.shape_cast %222 : vector<8xf32> to vector<8x1xf32>
    %cst_90 = arith.constant 3.200000e+01 : f32
    %224 = vector.broadcast %cst_90 : f32 to vector<8x1xf32>
    %225 = arith.divf %223, %224 : vector<8x1xf32>
    %cst_91 = arith.constant 9.99999974E-6 : f32
    %226 = vector.broadcast %cst_91 : f32 to vector<8x1xf32>
    %227 = arith.addf %225, %226 : vector<8x1xf32>
    %228 = math.rsqrt %227 : vector<8x1xf32>
    %229 = vector.broadcast %228 : vector<8x1xf32> to vector<8x32xf32>
    %230 = arith.mulf %220, %229 : vector<8x32xf32>
    %231 = vector.broadcast %213 : vector<1x32xf32> to vector<8x32xf32>
    %232 = arith.mulf %230, %231 : vector<8x32xf32>
    %233 = vector.broadcast %214 : vector<1x32xf32> to vector<8x32xf32>
    %234 = arith.addf %232, %233 : vector<8x32xf32>
    %c0_92 = arith.constant 0 : index
    %c0_93 = arith.constant 0 : index
    %c0_94 = arith.constant 0 : index
    %235 = vector.load %arg29[%c0_92, %c0_93, %c0_94] : memref<1x8x32xf32, #tpu.memory_space<vmem>>, vector<1x8x32xf32>
    %236 = vector.shape_cast %235 : vector<1x8x32xf32> to vector<8x32xf32>
    %237 = vector.shape_cast %234 : vector<8x32xf32> to vector<1x8x32xf32>
    tpu.vector_store %arg29[%c0_92, %c0_93, %c0_94], %237 {strides = array<i32>} : memref<1x8x32xf32, #tpu.memory_space<vmem>>, vector<1x8x32xf32>,
    return
  }
  func.func @transform_0(%arg0: i32) -> (i32, i32, i32) {
    %c0_i32 = arith.constant 0 : i32
    %c0_i32_0 = arith.constant 0 : i32
    %c0_i32_1 = arith.constant 0 : i32
    return %arg0, %c0_i32, %c0_i32_0 : i32, i32, i32
  }
  func.func @transform_1(%arg0: i32) -> (i32, i32, i32) {
    %c0_i32 = arith.constant 0 : i32
    %c0_i32_0 = arith.constant 0 : i32
    %c0_i32_1 = arith.constant 0 : i32
    return %arg0, %c0_i32, %c0_i32_0 : i32, i32, i32
  }
  func.func @transform_2(%arg0: i32) -> (i32, i32) {
    %c0_i32 = arith.constant 0 : i32
    %c0_i32_0 = arith.constant 0 : i32
    %c0_i32_1 = arith.constant 0 : i32
    return %c0_i32, %c0_i32_0 : i32, i32
  }
  func.func @transform_3(%arg0: i32) -> (i32, i32) {
    %c0_i32 = arith.constant 0 : i32
    %c0_i32_0 = arith.constant 0 : i32
    %c0_i32_1 = arith.constant 0 : i32
    return %c0_i32, %c0_i32_0 : i32, i32
  }
  func.func @transform_4(%arg0: i32) -> (i32, i32) {
    %c0_i32 = arith.constant 0 : i32
    %c0_i32_0 = arith.constant 0 : i32
    %c0_i32_1 = arith.constant 0 : i32
    return %c0_i32, %c0_i32_0 : i32, i32
  }
  func.func @transform_5(%arg0: i32) -> (i32, i32) {
    %c0_i32 = arith.constant 0 : i32
    %c0_i32_0 = arith.constant 0 : i32
    %c0_i32_1 = arith.constant 0 : i32
    return %c0_i32, %c0_i32_0 : i32, i32
  }
  func.func @transform_6(%arg0: i32) -> (i32, i32) {
    %c0_i32 = arith.constant 0 : i32
    %c0_i32_0 = arith.constant 0 : i32
    %c0_i32_1 = arith.constant 0 : i32
    return %c0_i32, %c0_i32_0 : i32, i32
  }
  func.func @transform_7(%arg0: i32) -> (i32, i32) {
    %c0_i32 = arith.constant 0 : i32
    %c0_i32_0 = arith.constant 0 : i32
    %c0_i32_1 = arith.constant 0 : i32
    return %c0_i32, %c0_i32_0 : i32, i32
  }
  func.func @transform_8(%arg0: i32) -> (i32, i32) {
    %c0_i32 = arith.constant 0 : i32
    %c0_i32_0 = arith.constant 0 : i32
    %c0_i32_1 = arith.constant 0 : i32
    return %c0_i32, %c0_i32_0 : i32, i32
  }
  func.func @transform_9(%arg0: i32) -> (i32, i32) {
    %c0_i32 = arith.constant 0 : i32
    %c0_i32_0 = arith.constant 0 : i32
    %c0_i32_1 = arith.constant 0 : i32
    return %c0_i32, %c0_i32_0 : i32, i32
  }
  func.func @transform_10(%arg0: i32) -> (i32, i32) {
    %c0_i32 = arith.constant 0 : i32
    %c0_i32_0 = arith.constant 0 : i32
    %c0_i32_1 = arith.constant 0 : i32
    return %c0_i32, %c0_i32_0 : i32, i32
  }
  func.func @transform_11(%arg0: i32) -> (i32, i32) {
    %c0_i32 = arith.constant 0 : i32
    %c0_i32_0 = arith.constant 0 : i32
    %c0_i32_1 = arith.constant 0 : i32
    return %c0_i32, %c0_i32_0 : i32, i32
  }
  func.func @transform_12(%arg0: i32) -> (i32, i32) {
    %c0_i32 = arith.constant 0 : i32
    %c0_i32_0 = arith.constant 0 : i32
    %c0_i32_1 = arith.constant 0 : i32
    return %c0_i32, %c0_i32_0 : i32, i32
  }
  func.func @transform_13(%arg0: i32) -> (i32, i32) {
    %c0_i32 = arith.constant 0 : i32
    %c0_i32_0 = arith.constant 0 : i32
    %c0_i32_1 = arith.constant 0 : i32
    return %c0_i32, %c0_i32_0 : i32, i32
  }
  func.func @transform_14(%arg0: i32) -> (i32, i32) {
    %c0_i32 = arith.constant 0 : i32
    %c0_i32_0 = arith.constant 0 : i32
    %c0_i32_1 = arith.constant 0 : i32
    return %c0_i32, %c0_i32_0 : i32, i32
  }
  func.func @transform_15(%arg0: i32) -> (i32, i32) {
    %c0_i32 = arith.constant 0 : i32
    %c0_i32_0 = arith.constant 0 : i32
    %c0_i32_1 = arith.constant 0 : i32
    return %c0_i32, %c0_i32_0 : i32, i32
  }
  func.func @transform_16(%arg0: i32) -> (i32, i32) {
    %c0_i32 = arith.constant 0 : i32
    %c0_i32_0 = arith.constant 0 : i32
    %c0_i32_1 = arith.constant 0 : i32
    return %c0_i32, %c0_i32_0 : i32, i32
  }
  func.func @transform_17(%arg0: i32) -> (i32, i32) {
    %c0_i32 = arith.constant 0 : i32
    %c0_i32_0 = arith.constant 0 : i32
    %c0_i32_1 = arith.constant 0 : i32
    return %c0_i32, %c0_i32_0 : i32, i32
  }
  func.func @transform_18(%arg0: i32) -> (i32, i32) {
    %c0_i32 = arith.constant 0 : i32
    %c0_i32_0 = arith.constant 0 : i32
    %c0_i32_1 = arith.constant 0 : i32
    return %c0_i32, %c0_i32_0 : i32, i32
  }
  func.func @transform_19(%arg0: i32) -> (i32, i32) {
    %c0_i32 = arith.constant 0 : i32
    %c0_i32_0 = arith.constant 0 : i32
    %c0_i32_1 = arith.constant 0 : i32
    return %c0_i32, %c0_i32_0 : i32, i32
  }
  func.func @transform_20(%arg0: i32) -> (i32, i32) {
    %c0_i32 = arith.constant 0 : i32
    %c0_i32_0 = arith.constant 0 : i32
    %c0_i32_1 = arith.constant 0 : i32
    return %c0_i32, %c0_i32_0 : i32, i32
  }
  func.func @transform_21(%arg0: i32) -> (i32, i32) {
    %c0_i32 = arith.constant 0 : i32
    %c0_i32_0 = arith.constant 0 : i32
    %c0_i32_1 = arith.constant 0 : i32
    return %c0_i32, %c0_i32_0 : i32, i32
  }
  func.func @transform_22(%arg0: i32) -> (i32, i32) {
    %c0_i32 = arith.constant 0 : i32
    %c0_i32_0 = arith.constant 0 : i32
    %c0_i32_1 = arith.constant 0 : i32
    return %c0_i32, %c0_i32_0 : i32, i32
  }
  func.func @transform_23(%arg0: i32) -> (i32, i32) {
    %c0_i32 = arith.constant 0 : i32
    %c0_i32_0 = arith.constant 0 : i32
    %c0_i32_1 = arith.constant 0 : i32
    return %c0_i32, %c0_i32_0 : i32, i32
  }
  func.func @transform_24(%arg0: i32) -> (i32, i32) {
    %c0_i32 = arith.constant 0 : i32
    %c0_i32_0 = arith.constant 0 : i32
    %c0_i32_1 = arith.constant 0 : i32
    return %c0_i32, %c0_i32_0 : i32, i32
  }
  func.func @transform_25(%arg0: i32) -> (i32, i32) {
    %c0_i32 = arith.constant 0 : i32
    %c0_i32_0 = arith.constant 0 : i32
    %c0_i32_1 = arith.constant 0 : i32
    return %c0_i32, %c0_i32_0 : i32, i32
  }
  func.func @transform_26(%arg0: i32) -> (i32, i32) {
    %c0_i32 = arith.constant 0 : i32
    %c0_i32_0 = arith.constant 0 : i32
    %c0_i32_1 = arith.constant 0 : i32
    return %c0_i32, %c0_i32_0 : i32, i32
  }
  func.func @transform_27(%arg0: i32) -> (i32, i32) {
    %c0_i32 = arith.constant 0 : i32
    %c0_i32_0 = arith.constant 0 : i32
    %c0_i32_1 = arith.constant 0 : i32
    return %c0_i32, %c0_i32_0 : i32, i32
  }
  func.func @transform_28(%arg0: i32) -> (i32, i32, i32) {
    %c0_i32 = arith.constant 0 : i32
    %c0_i32_0 = arith.constant 0 : i32
    %c0_i32_1 = arith.constant 0 : i32
    return %arg0, %c0_i32, %c0_i32_0 : i32, i32, i32
  }
}

</mosaic_0001>

<bundles_post_ra>
// kernel: tpu_custom_call.1
= control target key start
LH: loop header
LB: loop body
LE: loop exit
PB: predicated region body
PF: predicated region fallthrough
CT: control target
= control target key end

     0   :  { %s5232_s0 = inlined_call_operand.vmem [shape: f32[2,8,32], index: 0, kind: input, shape index: {}]   ;;  %s5233_s1 = inlined_call_operand.vmem [shape: f32[2,8,32], index: 1, kind: input, shape index: {}]   ;;  %s5234_s2 = inlined_call_operand.vmem [shape: bf16[32,32], index: 2, kind: input, shape index: {}]   ;;  %s5235_s3 = inlined_call_operand.hbm [shape: f32[1,32], index: 3, kind: input, shape index: {}]   ;;  %s5236_s4 = inlined_call_operand.hbm [shape: bf16[32,32], index: 4, kind: input, shape index: {}]   ;;  %s5237_s5 = inlined_call_operand.hbm [shape: f32[1,32], index: 5, kind: input, shape index: {}]   ;;  %s5238_s6 = inlined_call_operand.hbm [shape: bf16[32,32], index: 6, kind: input, shape index: {}]   ;;  %s5239_s7 = inlined_call_operand.hbm [shape: f32[1,32], index: 7, kind: input, shape index: {}]   ;;  %s5240_s8 = inlined_call_operand.hbm [shape: bf16[32,32], index: 8, kind: input, shape index: {}]   ;;  %s5241_s9 = inlined_call_operand.hbm [shape: f32[1,32], index: 9, kind: input, shape index: {}]   ;;  %s5242_s10 = inlined_call_operand.hbm [shape: f32[1,32], index: 10, kind: input, shape index: {}]   ;;  %s5243_s11 = inlined_call_operand.hbm [shape: f32[1,32], index: 11, kind: input, shape index: {}]   ;;  %s5244_s12 = inlined_call_operand.vmem [shape: bf16[32,32], index: 12, kind: input, shape index: {}]   ;;  %s5245_s13 = inlined_call_operand.hbm [shape: f32[1,32], index: 13, kind: input, shape index: {}]   ;;  %s5246_s14 = inlined_call_operand.vmem [shape: bf16[32,32], index: 14, kind: input, shape index: {}]   ;;  %s5247_s15 = inlined_call_operand.hbm [shape: f32[1,32], index: 15, kind: input, shape index: {}]   ;;  %s5248_s16 = inlined_call_operand.hbm [shape: bf16[32,32], index: 16, kind: input, shape index: {}]   ;;  %s5249_s17 = inlined_call_operand.hbm [shape: f32[1,32], index: 17, kind: input, shape index: {}]   ;;  %s5250_s18 = inlined_call_operand.vmem [shape: bf16[32,32], index: 18, kind: input, shape index: {}]   ;;  %s5251_s19 = inlined_call_operand.vmem [shape: f32[1,32], index: 19, kind: input, shape index: {}]   ;;  %s5252_s20 = inlined_call_operand.vmem [shape: f32[1,32], index: 20, kind: input, shape index: {}]   ;;  %s5253_s21 = inlined_call_operand.vmem [shape: f32[1,32], index: 21, kind: input, shape index: {}]   ;;  %s5254_s22 = inlined_call_operand.vmem [shape: bf16[32,64], index: 22, kind: input, shape index: {}]   ;;  %s5255_s23 = inlined_call_operand.vmem [shape: f32[1,64], index: 23, kind: input, shape index: {}]   ;;  %s5256_s24 = inlined_call_operand.vmem [shape: bf16[64,32], index: 24, kind: input, shape index: {}]   ;;  %s5257_s25 = inlined_call_operand.vmem [shape: f32[1,32], index: 25, kind: input, shape index: {}]   ;;  %s5258_s26 = inlined_call_operand.vmem [shape: f32[1,32], index: 26, kind: input, shape index: {}]   ;;  %s5259_s27 = inlined_call_operand.vmem [shape: f32[1,32], index: 27, kind: input, shape index: {}]   ;;  %s5260_s28 = inlined_call_operand.hbm [shape: f32[2,8,32], index: 28, kind: output, shape index: {}]  }
   0x1   :  { %5293 = sst [smem:[#allocation40_spill]] %s5232_s0 }
   0x2   :  { %5294 = sst [smem:[#allocation41_spill]] %s5233_s1 }
   0x3   :  { %5295 = sst [smem:[#allocation42_spill]] %s5234_s2 }
   0x4   :  { %5296 = sst [smem:[#allocation43_spill]] %s5235_s3 }
   0x5   :  { %5297 = sst [smem:[#allocation44_spill]] %s5236_s4 }
   0x6   :  { %5298 = sst [smem:[#allocation45_spill]] %s5237_s5 }
   0x7   :  { %5299 = sst [smem:[#allocation46_spill]] %s5238_s6 }
   0x8   :  { %5300 = sst [smem:[#allocation47_spill]] %s5239_s7 }
   0x9   :  { %5301 = sst [smem:[#allocation48_spill]] %s5240_s8 }
   0xa   :  { %5302 = sst [smem:[#allocation49_spill]] %s5241_s9 }
   0xb   :  { %5303 = sst [smem:[#allocation50_spill]] %s5242_s10 }
   0xc   :  { %5304 = sst [smem:[#allocation51_spill]] %s5243_s11 }
   0xd   :  { %5305 = sst [smem:[#allocation52_spill]] %s5244_s12 }
   0xe   :  { %5306 = sst [smem:[#allocation53_spill]] %s5253_s21 }
   0xf   :  { %5307 = sst [smem:[#allocation54_spill]] %s5255_s23 }
  0x10   :  { %5308 = sst [smem:[#allocation55_spill]] %s5257_s25 }
  0x11   :  { %5309 = sst [smem:[#allocation56_spill]] %s5258_s26 }
  0x12   :  { %5310 = sst [smem:[#allocation57_spill]] %s5259_s27 }
  0x13   :  { %5311 = sst [smem:[#allocation58_spill]] %s5260_s28 }
  0x14   :  { %33 = vsyncpa [#allocation3], 0 }
  0x15   :  { %34 = vsyncpa [#allocation6], 0 }
  0x16   :  { %35 = vsyncpa [#allocation9], 0 }
  0x17   :  { %36 = vsyncpa [#allocation12], 0 }
  0x18   :  { %37 = vsyncpa [#allocation15], 0 }
  0x19   :  { %38 = vsyncpa [#allocation18], 0 }
  0x1a   :  { %39 = vsyncpa [#allocation21], 0 }
  0x1b   :  { %40 = vsyncpa [#allocation4], 0 }
  0x1c   :  { %42 = vsyncpa [#allocation4 + $0x1], 0  ;;  %s4561_s8 = smov 0   ;;  %s4563_s5 = smov 0  }
  0x1d   :  { %s4565_s9 = smov 0   ;;  %s4567_s30 = smov 0  }
  0x1e LB: > { %5312 = sst [smem:[#allocation32_spill]] %s4378_s8  ;;  %s4582_s3 = sadd.s32 4294967295, %s4390_s30   ;;  %s4390_s30 = sphi %s4567_s30, %s5369_s30   ;;  %s4386_s9 = sphi %s4565_s9, %s5372_s9   ;;  %s4382_s5 = sphi %s4563_s5, %s5371_s5   ;;  %s4378_s8 = sphi %s4561_s8, %s5370_s8  }
  0x1f   : > { %5313 = sst [smem:[#allocation33_spill]] %s4382_s5  ;;  %s3359_s6 = sadd.s32 4294967294, %s4390_s30  }
  0x20   : > { %5314 = sst [smem:[#allocation34_spill]] %s4386_s9  ;;  %s4586_s10 = sadd.s32 1, %s4390_s30  }
  0x21   : > { %5315 = sst [smem:[#allocation35_spill]] %s4390_s30  ;;  %s653_s0 = sadd.s32 1, %s4386_s9 }
  0x22   : > { %5316 = sst [smem:[#allocation36_spill]] %s4586_s10  ;;  %s650_s11 = ssub.s32 %s4390_s30, %s4586_s10 }
  0x23   : > { %p663_p0 = scmp.ne.s32.totalorder %s4386_s9, %s4382_s5  ;;  %p651_p1 = scmp.eq.s32.totalorder %s650_s11, 0 }
  0x24   : > { %p664_p2 = scmp.eq.s32.totalorder %s4582_s3, 1  ;;  %p669_p3 = scmp.ne.s32.totalorder %s4382_s5, %s4378_s8 }
  0x25   : > { %p670_p4 = scmp.eq.s32.totalorder %s3359_s6, 1  ;;  %p3360_p7 = scmp.ge.s32.totalorder %s4390_s30, 1 }
  0x26   : > { %s4597_s29 = scalar_select %p651_p1, %s4386_s9, %s653_s0  }
  0x27   : > { %p4599_p5 = por %p664_p2, %p663_p0  ;;  %p4603_p6 = por %p670_p4, %p669_p3 }
  0x28   : > { %5317 = sst [smem:[#allocation37_spill]] %s4597_s29  ;;  %p677_p8 = scmp.lt.s32.totalorder %s4390_s30, 3 }
  0x29   : > { %s5318_s2 = scalar_select %p4599_p5, 1, 0 }
  0x2a   : > { %s5320_s7 = scalar_select %p4603_p6, 1, 0 }
  0x2b   : > { %5319 = sst [smem:[#allocation38_spill]] %s5318_s2  ;;  %p5279_p9 = scmp.eq.s32.totalorder %s4582_s3, 0 }
  0x2c   : > { %5321 = sst [smem:[#allocation39_spill]] %s5320_s7  ;;  %p4610_p10 = pnand %p3360_p7, %p677_p8 }
  0x2d   : > { %s4392_s1 = smov [#allocation5]   ;;  %s4393_s0 = smov [#allocation8]  }
  0x2e   : > { %s5322_s12 = scalar_select %p4610_p10, 1, 0 }
  0x2f   : > { %s703_s4 = sshll.u32 %s4392_s1, 4  ;;  %p3750_p11 = pneg %p4610_p10  ;;  %s4616_s4 = int_to_ptr.vmem [resolvable:$true] %s703_s4 }
  0x30   : > { %s727_s11 = sshll.u32 %s4393_s0, 4  ;;  %s4394_s29 = smov [#allocation11]   ;;  %s4624_s11 = int_to_ptr.vmem [resolvable:$true] %s727_s11 }
  0x31   : > { %p4620_p12 = pnand %p5279_p9, %p3750_p11  ;;  %s4626_s9 = sshll.u32 %s4394_s29, 4  ;;  %s752_s9 = int_to_ptr.vmem [resolvable:$true] %s4626_s9 }
  0x32   : > { %s5324_s1 = sld [smem:[#allocation44_spill]] }
  0x33   : > { %p4636_p0 = pneg %p4620_p12 }
  0x38   : > { %s3936_s8 = scalar_lea.hbm %s5324_s1, 256 }
  0x39   : > { %p3937_p13 = scmp.ne.s32.totalorder %s5324_s1, %s3936_s8  ;;  %p3943_p3 = scmp.lt.u32.totalorder %s3936_s8, %s5324_s1 }
  0x3b   : > { %p3939_p1 = pnand %p4636_p0, %p3937_p13 }
  0x3d   : > { %p3940_p2 = pneg %p3939_p1 }
  0x3f   : > { %p3945_p4 = pnand %p3943_p3, %p3940_p2 }
  0x41   : > { %3948 = shalt.err (!%p3945_p4)
}
  0x42   : > { %s3949_s28 = scalar_lea.vmem %s4616_s4, 256  ;;  %p3957_p9 = scmp.lt.s32.totalorder %s4616_s4, %s4616_s4 }
  0x43   : > { %p3950_p7 = scmp.ne.s32.totalorder %s4616_s4, %s3949_s28  ;;  %p3958_p6 = scmp.lt.s32.totalorder %s3949_s28, %s3949_s28 }
  0x45   : > { %p3952_p8 = pnand %p3950_p7, %p4636_p0  ;;  %p3959_p13 = por %p3958_p6, %p3957_p9 }
  0x47   : > { %p3953_p11 = pneg %p3952_p8 }
  0x49   : > { %p3960_p1 = pnand %p3959_p13, %p3953_p11 }
  0x4b   : > { %3963 = shalt.err (!%p3960_p1)
}
  0x4c   : > { %s4395_s30 = smov 64   ;;  %s4396_s8 = smov 4  }
  0x4d   : > { %3756 = dma.hbm_to_vmem [thread:$0]  (!%p4620_p12), %s5324_s1, 256, %s4616_s4, [#allocation6], %s4395_s30, %s4395_s30, %s4396_s8  }
  0x4e   : > { %s5326_s26 = sld [smem:[#allocation46_spill]] }
  0x54   : > { %s3964_s28 = scalar_lea.hbm %s5326_s26, 256 }
  0x55   : > { %p3965_p6 = scmp.ne.s32.totalorder %s5326_s26, %s3964_s28  ;;  %p3971_p3 = scmp.lt.u32.totalorder %s3964_s28, %s5326_s26 }
  0x57   : > { %p3967_p9 = pnand %p3965_p6, %p4636_p0 }
  0x59   : > { %p3968_p2 = pneg %p3967_p9 }
  0x5b   : > { %p3973_p4 = pnand %p3971_p3, %p3968_p2 }
  0x5d   : > { %3976 = shalt.err (!%p3973_p4)
}
  0x5e   : > { %s3977_s4 = scalar_lea.vmem %s4624_s11, 256  ;;  %p3985_p13 = scmp.lt.s32.totalorder %s4624_s11, %s4624_s11 }
  0x5f   : > { %p3978_p7 = scmp.ne.s32.totalorder %s4624_s11, %s3977_s4  ;;  %p3986_p1 = scmp.lt.s32.totalorder %s3977_s4, %s3977_s4 }
  0x61   : > { %p3980_p8 = pnand %p3978_p7, %p4636_p0  ;;  %p3987_p6 = por %p3986_p1, %p3985_p13 }
  0x63   : > { %p3981_p11 = pneg %p3980_p8 }
  0x65   : > { %p3988_p9 = pnand %p3987_p6, %p3981_p11 }
  0x67   : > { %3991 = shalt.err (!%p3988_p9)
}
  0x68   : > { %3762 = dma.hbm_to_vmem [thread:$0]  (!%p4620_p12), %s5326_s26, 256, %s4624_s11, [#allocation9], %s4395_s30, %s4395_s30, %s4396_s8  }
  0x69   : > { %s5327_s10 = sld [smem:[#allocation48_spill]] }
  0x6f   : > { %s3992_s7 = scalar_lea.hbm %s5327_s10, 256 }
  0x70   : > { %p3993_p2 = scmp.ne.s32.totalorder %s5327_s10, %s3992_s7  ;;  %p3999_p7 = scmp.lt.u32.totalorder %s3992_s7, %s5327_s10 }
  0x72   : > { %p3995_p3 = pnand %p3993_p2, %p4636_p0 }
  0x74   : > { %p3996_p4 = pneg %p3995_p3 }
  0x76   : > { %p4001_p8 = pnand %p3999_p7, %p3996_p4 }
  0x78   : > { %4004 = shalt.err (!%p4001_p8)
}
  0x79   : > { %s4005_s23 = scalar_lea.vmem %s752_s9, 256  ;;  %p4013_p6 = scmp.lt.s32.totalorder %s752_s9, %s752_s9 }
  0x7a   : > { %p4006_p11 = scmp.ne.s32.totalorder %s752_s9, %s4005_s23  ;;  %p4014_p9 = scmp.lt.s32.totalorder %s4005_s23, %s4005_s23 }
  0x7c   : > { %p4008_p13 = pnand %p4006_p11, %p4636_p0  ;;  %p4015_p5 = por %p4014_p9, %p4013_p6 }
  0x7e   : > { %p4009_p1 = pneg %p4008_p13 }
  0x80   : > { %p4016_p10 = pnand %p4015_p5, %p4009_p1 }
  0x82   : > { %4019 = shalt.err (!%p4016_p10)
}
  0x83   : > { %3768 = dma.hbm_to_vmem [thread:$0]  (!%p4620_p12), %s5327_s10, 256, %s752_s9, [#allocation12], %s4395_s30, %s4395_s30, %s4396_s8  }
  0x84   : > { %s4397_s5 = smov [#allocation14]   ;;  %s4398_s7 = smov [#allocation17]  }
  0x85   : > { %s776_s2 = sshll.u32 %s4397_s5, 4  ;;  %s801_s0 = sshll.u32 %s4398_s7, 4  ;;  %s777_s2 = int_to_ptr.vmem [resolvable:$true] %s776_s2  ;;  %s802_s0 = int_to_ptr.vmem [resolvable:$true] %s801_s0 }
  0x86   : > { %s5328_s4 = sld [smem:[#allocation50_spill]] }
  0x8c   : > { %s4020_s23 = scalar_lea.hbm %s5328_s4, 16 }
  0x8d   : > { %p4021_p5 = scmp.ne.s32.totalorder %s5328_s4, %s4020_s23  ;;  %p4027_p3 = scmp.lt.u32.totalorder %s4020_s23, %s5328_s4 }
  0x8f   : > { %p4023_p10 = pnand %p4021_p5, %p4636_p0 }
  0x91   : > { %p4024_p2 = pneg %p4023_p10 }
  0x93   : > { %p4029_p4 = pnand %p4027_p3, %p4024_p2 }
  0x95   : > { %4032 = shalt.err (!%p4029_p4)
}
  0x96   : > { %s4033_s9 = scalar_lea.vmem %s777_s2, 16  ;;  %s4040_s25 = scalar_lea.vmem %s777_s2, 32 }
  0x97   : > { %p4034_p7 = scmp.ne.s32.totalorder %s777_s2, %s4033_s9  ;;  %p4041_p13 = scmp.lt.s32.totalorder %s777_s2, %s777_s2 }
  0x98   : > { %p4042_p1 = scmp.lt.s32.totalorder %s4040_s25, %s4033_s9 }
  0x99   : > { %p4036_p8 = pnand %p4034_p7, %p4636_p0 }
  0x9a   : > { %p4043_p6 = por %p4042_p1, %p4041_p13 }
  0x9b   : > { %p4037_p11 = pneg %p4036_p8 }
  0x9d   : > { %p4044_p9 = pnand %p4043_p6, %p4037_p11 }
  0x9f   : > { %4047 = shalt.err (!%p4044_p9)
}
  0xa0   : > { %3774 = dma.hbm_to_vmem [thread:$0]  (!%p4620_p12), %s5328_s4, 16, %s777_s2, [#allocation15]  }
  0xa1   : > { %s4048_s7 = scalar_lea.hbm %s5245_s13, 16 }
  0xa2   : > { %p4049_p5 = scmp.ne.s32.totalorder %s5245_s13, %s4048_s7  ;;  %p4055_p3 = scmp.lt.u32.totalorder %s4048_s7, %s5245_s13 }
  0xa4   : > { %p4051_p10 = pnand %p4049_p5, %p4636_p0 }
  0xa6   : > { %p4052_p2 = pneg %p4051_p10 }
  0xa8   : > { %p4057_p4 = pnand %p4055_p3, %p4052_p2 }
  0xaa   : > { %4060 = shalt.err (!%p4057_p4)
}
  0xab   : > { %s4061_s9 = scalar_lea.vmem %s802_s0, 16  ;;  %s4068_s2 = scalar_lea.vmem %s802_s0, 32 }
  0xac   : > { %p4062_p7 = scmp.ne.s32.totalorder %s802_s0, %s4061_s9  ;;  %p4069_p13 = scmp.lt.s32.totalorder %s802_s0, %s802_s0 }
  0xad   : > { %p4070_p1 = scmp.lt.s32.totalorder %s4068_s2, %s4061_s9 }
  0xae   : > { %p4064_p8 = pnand %p4062_p7, %p4636_p0 }
  0xaf   : > { %p4071_p6 = por %p4070_p1, %p4069_p13 }
  0xb0   : > { %p4065_p11 = pneg %p4064_p8 }
  0xb2   : > { %p4072_p9 = pnand %p4071_p6, %p4065_p11 }
  0xb4   : > { %4075 = shalt.err (!%p4072_p9)
}
  0xb5   : > { %3780 = dma.hbm_to_vmem [thread:$0]  (!%p4620_p12), %s5245_s13, 16, %s802_s0, [#allocation18]  }
  0xb6   : > { %s4399_s1 = smov [#allocation20]   ;;  %s4400_s5 = smov [#allocation2]  }
  0xb7   : > { %s825_s21 = sshll.u32 %s4399_s1, 4  ;;  %s693_s7 = sshll.u32 %s4400_s5, 4  ;;  %s826_s21 = int_to_ptr.vmem [resolvable:$true] %s825_s21  ;;  %s694_s7 = int_to_ptr.vmem [resolvable:$true] %s693_s7 }
  0xb8   : > { %s4076_s23 = scalar_lea.hbm %s5248_s16, 256 }
  0xb9   : > { %p4077_p5 = scmp.ne.s32.totalorder %s5248_s16, %s4076_s23  ;;  %p4083_p3 = scmp.lt.u32.totalorder %s4076_s23, %s5248_s16 }
  0xbb   : > { %p4079_p10 = pnand %p4077_p5, %p4636_p0 }
  0xbd   : > { %p4080_p2 = pneg %p4079_p10 }
  0xbf   : > { %p4085_p4 = pnand %p4083_p3, %p4080_p2 }
  0xc1   : > { %4088 = shalt.err (!%p4085_p4)
}
  0xc2   : > { %s4089_s0 = scalar_lea.vmem %s826_s21, 256  ;;  %p4097_p13 = scmp.lt.s32.totalorder %s826_s21, %s826_s21 }
  0xc3   : > { %p4090_p7 = scmp.ne.s32.totalorder %s826_s21, %s4089_s0  ;;  %p4098_p1 = scmp.lt.s32.totalorder %s4089_s0, %s4089_s0 }
  0xc5   : > { %p4092_p8 = pnand %p4090_p7, %p4636_p0  ;;  %p4099_p6 = por %p4098_p1, %p4097_p13 }
  0xc7   : > { %p4093_p11 = pneg %p4092_p8 }
  0xc9   : > { %p4100_p9 = pnand %p4099_p6, %p4093_p11 }
  0xcb   : > { %4103 = shalt.err (!%p4100_p9)
}
  0xcc   : > { %3786 = dma.hbm_to_vmem [thread:$0]  (!%p4620_p12), %s5248_s16, 256, %s826_s21, [#allocation21], %s4395_s30, %s4395_s30, %s4396_s8  }
  0xcd   : > { %s5329_s28 = sld [smem:[#allocation43_spill]] }
  0xd3   : > { %s4104_s23 = scalar_lea.hbm %s5329_s28, 16 }
  0xd4   : > { %p4105_p5 = scmp.ne.s32.totalorder %s5329_s28, %s4104_s23  ;;  %p4111_p3 = scmp.lt.u32.totalorder %s4104_s23, %s5329_s28 }
  0xd6   : > { %p4107_p10 = pnand %p4105_p5, %p4636_p0 }
  0xd8   : > { %p4108_p2 = pneg %p4107_p10 }
  0xda   : > { %p4113_p4 = pnand %p4111_p3, %p4108_p2 }
  0xdc   : > { %4116 = shalt.err (!%p4113_p4)
}
  0xdd   : > { %s4117_s0 = scalar_lea.vmem %s694_s7, 16  ;;  %s4124_s30 = scalar_lea.vmem %s694_s7, 32 }
  0xde   : > { %p4118_p7 = scmp.ne.s32.totalorder %s694_s7, %s4117_s0  ;;  %p4125_p13 = scmp.lt.s32.totalorder %s694_s7, %s694_s7 }
  0xdf   : > { %p4126_p1 = scmp.lt.s32.totalorder %s4124_s30, %s4117_s0 }
  0xe0   : > { %p4120_p8 = pnand %p4118_p7, %p4636_p0 }
  0xe1   : > { %p4127_p6 = por %p4126_p1, %p4125_p13 }
  0xe2   : > { %p4121_p11 = pneg %p4120_p8 }
  0xe4   : > { %p4128_p9 = pnand %p4127_p6, %p4121_p11 }
  0xe6   : > { %4131 = shalt.err (!%p4128_p9)
}
  0xe7   : > { %3753 = dma.hbm_to_vmem [thread:$0]  (!%p4620_p12), %s5329_s28, 16, %s694_s7, [#allocation3]  }
  0xe8   : > { %s4401_s26 = smov [#allocation7]   ;;  %s4402_s5 = smov [#allocation10]  }
  0xe9   : > { %s717_s1 = sshll.u32 %s4401_s26, 4  ;;  %s741_s29 = sshll.u32 %s4402_s5, 4  ;;  %s718_s1 = int_to_ptr.vmem [resolvable:$true] %s717_s1  ;;  %s742_s29 = int_to_ptr.vmem [resolvable:$true] %s741_s29 }
  0xea   : > { %s5330_s9 = sld [smem:[#allocation45_spill]] }
  0xf0   : > { %s5331_s2 = smov %s5330_s9  ;;  %s4132_s25 = scalar_lea.hbm %s5330_s9, 16 }
  0xf1   : > { %p4133_p5 = scmp.ne.s32.totalorder %s5331_s2, %s4132_s25  ;;  %p4139_p3 = scmp.lt.u32.totalorder %s4132_s25, %s5331_s2 }
  0xf3   : > { %p4135_p10 = pnand %p4133_p5, %p4636_p0 }
  0xf5   : > { %p4136_p2 = pneg %p4135_p10 }
  0xf7   : > { %p4141_p4 = pnand %p4139_p3, %p4136_p2 }
  0xf9   : > { %4144 = shalt.err (!%p4141_p4)
}
  0xfa   : > { %s4145_s7 = scalar_lea.vmem %s718_s1, 16  ;;  %s4152_s21 = scalar_lea.vmem %s718_s1, 32 }
  0xfb   : > { %p4146_p7 = scmp.ne.s32.totalorder %s718_s1, %s4145_s7  ;;  %p4153_p13 = scmp.lt.s32.totalorder %s718_s1, %s718_s1 }
  0xfc   : > { %p4154_p1 = scmp.lt.s32.totalorder %s4152_s21, %s4145_s7 }
  0xfd   : > { %p4148_p8 = pnand %p4146_p7, %p4636_p0 }
  0xfe   : > { %p4155_p6 = por %p4154_p1, %p4153_p13 }
  0xff   : > { %p4149_p11 = pneg %p4148_p8 }
 0x101   : > { %p4156_p9 = pnand %p4155_p6, %p4149_p11 }
 0x103   : > { %4159 = shalt.err (!%p4156_p9)
}
 0x104   : > { %3759 = dma.hbm_to_vmem [thread:$0]  (!%p4620_p12), %s5331_s2, 16, %s718_s1, [#allocation6]  }
 0x105   : > { %s5332_s11 = sld [smem:[#allocation47_spill]] }
 0x10b   : > { %s4160_s9 = scalar_lea.hbm %s5332_s11, 16 }
 0x10c   : > { %p4161_p5 = scmp.ne.s32.totalorder %s5332_s11, %s4160_s9  ;;  %p4167_p3 = scmp.lt.u32.totalorder %s4160_s9, %s5332_s11 }
 0x10e   : > { %p4163_p10 = pnand %p4161_p5, %p4636_p0 }
 0x110   : > { %p4164_p2 = pneg %p4163_p10 }
 0x112   : > { %p4169_p4 = pnand %p4167_p3, %p4164_p2 }
 0x114   : > { %4172 = shalt.err (!%p4169_p4)
}
 0x115   : > { %s4173_s7 = scalar_lea.vmem %s742_s29, 16  ;;  %s4180_s1 = scalar_lea.vmem %s742_s29, 32 }
 0x116   : > { %p4174_p7 = scmp.ne.s32.totalorder %s742_s29, %s4173_s7  ;;  %p4181_p13 = scmp.lt.s32.totalorder %s742_s29, %s742_s29 }
 0x117   : > { %p4182_p1 = scmp.lt.s32.totalorder %s4180_s1, %s4173_s7 }
 0x118   : > { %p4176_p8 = pnand %p4174_p7, %p4636_p0 }
 0x119   : > { %p4183_p6 = por %p4182_p1, %p4181_p13 }
 0x11a   : > { %p4177_p11 = pneg %p4176_p8 }
 0x11c   : > { %p4184_p9 = pnand %p4183_p6, %p4177_p11 }
 0x11e   : > { %4187 = shalt.err (!%p4184_p9)
}
 0x11f   : > { %3765 = dma.hbm_to_vmem [thread:$0]  (!%p4620_p12), %s5332_s11, 16, %s742_s29, [#allocation9]  }
 0x120   : > { %s4403_s5 = smov [#allocation13]   ;;  %s4404_s23 = smov [#allocation16]  }
 0x121   : > { %s765_s4 = sshll.u32 %s4403_s5, 4  ;;  %s787_s9 = sshll.u32 %s4404_s23, 4  ;;  %s766_s4 = int_to_ptr.vmem [resolvable:$true] %s765_s4  ;;  %s788_s9 = int_to_ptr.vmem [resolvable:$true] %s787_s9 }
 0x122   : > { %s5333_s30 = sld [smem:[#allocation49_spill]] }
 0x128   : > { %s5334_s2 = smov %s5333_s30  ;;  %s4188_s8 = scalar_lea.hbm %s5333_s30, 16 }
 0x129   : > { %p4189_p5 = scmp.ne.s32.totalorder %s5334_s2, %s4188_s8  ;;  %p4195_p3 = scmp.lt.u32.totalorder %s4188_s8, %s5334_s2 }
 0x12b   : > { %p4191_p10 = pnand %p4189_p5, %p4636_p0 }
 0x12d   : > { %p4192_p2 = pneg %p4191_p10 }
 0x12f   : > { %p4197_p4 = pnand %p4195_p3, %p4192_p2 }
 0x131   : > { %4200 = shalt.err (!%p4197_p4)
}
 0x132   : > { %s4201_s29 = scalar_lea.vmem %s766_s4, 16  ;;  %s4208_s26 = scalar_lea.vmem %s766_s4, 32 }
 0x133   : > { %p4202_p7 = scmp.ne.s32.totalorder %s766_s4, %s4201_s29  ;;  %p4209_p13 = scmp.lt.s32.totalorder %s766_s4, %s766_s4 }
 0x134   : > { %p4210_p1 = scmp.lt.s32.totalorder %s4208_s26, %s4201_s29 }
 0x135   : > { %p4204_p8 = pnand %p4202_p7, %p4636_p0 }
 0x136   : > { %p4211_p6 = por %p4210_p1, %p4209_p13 }
 0x137   : > { %p4205_p11 = pneg %p4204_p8 }
 0x139   : > { %p4212_p9 = pnand %p4211_p6, %p4205_p11 }
 0x13b   : > { %4215 = shalt.err (!%p4212_p9)
}
 0x13c   : > { %3771 = dma.hbm_to_vmem [thread:$0]  (!%p4620_p12), %s5334_s2, 16, %s766_s4, [#allocation12]  }
 0x13d   : > { %s5335_s0 = sld [smem:[#allocation51_spill]] }
 0x143   : > { %s4216_s30 = scalar_lea.hbm %s5335_s0, 16 }
 0x144   : > { %p4217_p5 = scmp.ne.s32.totalorder %s5335_s0, %s4216_s30  ;;  %p4223_p3 = scmp.lt.u32.totalorder %s4216_s30, %s5335_s0 }
 0x146   : > { %p4219_p10 = pnand %p4217_p5, %p4636_p0 }
 0x148   : > { %p4220_p2 = pneg %p4219_p10 }
 0x14a   : > { %p4225_p4 = pnand %p4223_p3, %p4220_p2 }
 0x14c   : > { %4228 = shalt.err (!%p4225_p4)
}
 0x14d   : > { %s4229_s29 = scalar_lea.vmem %s788_s9, 16  ;;  %s4236_s4 = scalar_lea.vmem %s788_s9, 32 }
 0x14e   : > { %p4230_p7 = scmp.ne.s32.totalorder %s788_s9, %s4229_s29  ;;  %p4237_p13 = scmp.lt.s32.totalorder %s788_s9, %s788_s9 }
 0x14f   : > { %p4238_p1 = scmp.lt.s32.totalorder %s4236_s4, %s4229_s29 }
 0x150   : > { %p4232_p8 = pnand %p4230_p7, %p4636_p0 }
 0x151   : > { %p4239_p6 = por %p4238_p1, %p4237_p13 }
 0x152   : > { %p4233_p11 = pneg %p4232_p8 }
 0x154   : > { %p4240_p9 = pnand %p4239_p6, %p4233_p11 }
 0x156   : > { %4243 = shalt.err (!%p4240_p9)
}
 0x157   : > { %3777 = dma.hbm_to_vmem [thread:$0]  (!%p4620_p12), %s5335_s0, 16, %s788_s9, [#allocation15]  }
 0x158   : > { %s4405_s23 = smov [#allocation19]   ;;  %s4406_s25 = smov [#allocation22]  }
 0x159   : > { %s815_s10 = sshll.u32 %s4405_s23, 4  ;;  %s839_s30 = sshll.u32 %s4406_s25, 4  ;;  %s816_s10 = int_to_ptr.vmem [resolvable:$true] %s815_s10  ;;  %s840_s30 = int_to_ptr.vmem [resolvable:$true] %s839_s30 }
 0x15a   : > { %s4244_s1 = scalar_lea.hbm %s5247_s15, 16 }
 0x15b   : > { %p4245_p5 = scmp.ne.s32.totalorder %s5247_s15, %s4244_s1  ;;  %p4251_p3 = scmp.lt.u32.totalorder %s4244_s1, %s5247_s15 }
 0x15d   : > { %p4247_p10 = pnand %p4245_p5, %p4636_p0 }
 0x15f   : > { %p4248_p2 = pneg %p4247_p10 }
 0x161   : > { %p4253_p4 = pnand %p4251_p3, %p4248_p2 }
 0x163   : > { %4256 = shalt.err (!%p4253_p4)
}
 0x164   : > { %s4257_s9 = scalar_lea.vmem %s816_s10, 16  ;;  %s4264_s5 = scalar_lea.vmem %s816_s10, 32 }
 0x165   : > { %p4258_p7 = scmp.ne.s32.totalorder %s816_s10, %s4257_s9  ;;  %p4265_p13 = scmp.lt.s32.totalorder %s816_s10, %s816_s10 }
 0x166   : > { %p4266_p1 = scmp.lt.s32.totalorder %s4264_s5, %s4257_s9 }
 0x167   : > { %p4260_p8 = pnand %p4258_p7, %p4636_p0 }
 0x168   : > { %p4267_p6 = por %p4266_p1, %p4265_p13 }
 0x169   : > { %p4261_p11 = pneg %p4260_p8 }
 0x16b   : > { %p4268_p9 = pnand %p4267_p6, %p4261_p11 }
 0x16d   : > { %4271 = shalt.err (!%p4268_p9)
}
 0x16e   : > { %3783 = dma.hbm_to_vmem [thread:$0]  (!%p4620_p12), %s5247_s15, 16, %s816_s10, [#allocation18]  }
 0x16f   : > { %s4272_s1 = scalar_lea.hbm %s5249_s17, 16 }
 0x170   : > { %p4273_p5 = scmp.ne.s32.totalorder %s5249_s17, %s4272_s1  ;;  %p4279_p3 = scmp.lt.u32.totalorder %s4272_s1, %s5249_s17 }
 0x172   : > { %p4275_p10 = pnand %p4273_p5, %p4636_p0 }
 0x174   : > { %p4276_p2 = pneg %p4275_p10 }
 0x176   : > { %p4281_p4 = pnand %p4279_p3, %p4276_p2 }
 0x178   : > { %4284 = shalt.err (!%p4281_p4)
}
 0x179   : > { %s4285_s9 = scalar_lea.vmem %s840_s30, 16  ;;  %s4292_s10 = scalar_lea.vmem %s840_s30, 32 }
 0x17a   : > { %p4286_p7 = scmp.ne.s32.totalorder %s840_s30, %s4285_s9  ;;  %p4293_p13 = scmp.lt.s32.totalorder %s840_s30, %s840_s30 }
 0x17b   : > { %p4294_p1 = scmp.lt.s32.totalorder %s4292_s10, %s4285_s9 }
 0x17c   : > { %p4288_p8 = pnand %p4286_p7, %p4636_p0 }
 0x17d   : > { %p4295_p6 = por %p4294_p1, %p4293_p13 }
 0x17e   : > { %p4289_p11 = pneg %p4288_p8 }
 0x180   : > { %p4296_p9 = pnand %p4295_p6, %p4289_p11 }
 0x182   : > { %4299 = shalt.err (!%p4296_p9)
}
 0x183   : > { %3789 = dma.hbm_to_vmem [thread:$0]  (!%p4620_p12), %s5249_s17, 16, %s840_s30, [#allocation21]  }
 0x184   : > { %p5336_p5 = scmp.ne.s32.totalorder %s5322_s12, 0 }
 0x185   : > { %p5337_p10 = scmp.eq.s32.totalorder (!%p5336_p5), %s4582_s3, 0 }
 0x186   : > { %896 = sbr.rel (%p5336_p5) target bundleno = 4653 (0x122d), region = 132 }
 0x18d   : > { %4345 = dma.done.wait (%p5337_p10), [#allocation3], 16   ;;  %p5338_p0 = pmov %p5337_p10 }
 0x18f   : > { %4347 = vsyncadd (%p5338_p0), [#allocation3], 4294967280  ;;  %p5339_p2 = pmov %p5338_p0 }
 0x190   : > { %p5340_p3 = pmov %p5338_p0 }
 0x191   : > { %4349 = dma.done.wait (%p5339_p2), [#allocation6], 272  }
 0x192   : > { %4351 = vsyncadd (%p5340_p3), [#allocation6], 4294967024  ;;  %p5341_p4 = pmov %p5338_p0 }
 0x193   : > { %p5342_p12 = pmov %p5338_p0 }
 0x194   : > { %4353 = dma.done.wait (%p5341_p4), [#allocation9], 272  }
 0x195   : > { %4355 = vsyncadd (%p5342_p12), [#allocation9], 4294967024  ;;  %p5343_p7 = pmov %p5338_p0 }
 0x196   : > { %p5344_p8 = pmov %p5338_p0 }
 0x197   : > { %4357 = dma.done.wait (%p5343_p7), [#allocation12], 272  }
 0x198   : > { %4359 = vsyncadd (%p5344_p8), [#allocation12], 4294967024  ;;  %p5345_p11 = pmov %p5338_p0 }
 0x199   : > { %p5346_p13 = pmov %p5338_p0 }
 0x19a   : > { %4361 = dma.done.wait (%p5345_p11), [#allocation15], 32  }
 0x19b   : > { %4363 = vsyncadd (%p5346_p13), [#allocation15], 4294967264  ;;  %p5347_p1 = pmov %p5338_p0 }
 0x19c   : > { %p5348_p6 = pmov %p5338_p0 }
 0x19d   : > { %4365 = dma.done.wait (%p5347_p1), [#allocation18], 32  }
 0x19e   : > { %4367 = vsyncadd (%p5348_p6), [#allocation18], 4294967264  ;;  %p5349_p9 = pmov %p5338_p0 }
 0x19f   : > { %p5350_p5 = pmov %p5338_p0 }
 0x1a0   : > { %4369 = dma.done.wait (%p5349_p9), [#allocation21], 272  }
 0x1a1   : > { %4371 = vsyncadd (%p5350_p5), [#allocation21], 4294967024  ;;  %p1021_p10 = scmp.lt.s32.totalorder %s4582_s3, 1  ;;  %v4407_v0 = vmov 0.0   ;;  %vm4408_vm0 = vmmov 0   ;;  %s5351_s25 = sld [smem:[#allocation40_spill]] }
 0x1a2   : > { %3532 = vmatprep.subr.bf16.mxu1 %v4407_v0  ;;  %3536 = vmatprep.mubr.msk.bf16.mxu1 %vm4408_vm0, %v4407_v0  ;;  %s5352_s21 = sld [smem:[#allocation42_spill]]  ;;  %vm1071_vm1 = vcmask 261120   ;;  %v3878_v4 = vld [vmem:[#allocation5] sm:$0xff]   ;;  %v3879_v6 = vld [vmem:[#allocation5 + $0x8] sm:$0xff]   ;;  %v3880_v7 = vld [vmem:[#allocation8] sm:$0xff]   ;;  %vm1256_vm2 = vcmask 64512  }
 0x1a3   : > { %s4926_s27 = scalar_select %p1021_p10, %s4582_s3, 1  ;;  %3548 = vmatprep.subr.bf16.mxu0 %v4407_v0  ;;  %3552 = vmatprep.mubr.msk.bf16.mxu0 %vm4408_vm0, %v4407_v0  ;;  %v3881_v8 = vld [vmem:[#allocation8 + $0x8] sm:$0xff]   ;;  %v3396_v14 = vld [vmem:[#allocation7] ss:$0 sm:$0xff]  ;;  %v3400_v29 = vld [vmem:[#allocation10] ss:$0 sm:$0xff] }
 0x1a4   : > { %3549 = vmatpush3.bf16.msra.mxu0 %v3880_v7  ;;  %v3392_v13 = vld [vmem:[#allocation2] ss:$0 sm:$0xff]  ;;  %s4409_s26 = smov 112   ;;  %s4410_s9 = smov 120   ;;  %vm1902_vm3 = vcmask 130048   ;;  %vm1904_vm4 = vcmask 195584  }
 0x1a5   : > { %s3390_s12 = sshll.u32 %s4926_s27, 3  ;;  %3550 = vmatprep.subr.bf16.mxu0 %v4407_v0  ;;  %s4411_s10 = smov 104   ;;  %vm3073_vm5 = vcmask 523264  }
 0x1a6   : > { %s4412_s5 = smov 8   ;;  %s4413_s23 = smov 16  }
 0x1a7   : > { %s1024_s8 = scalar_lea.vmem %s5351_s25, %s3390_s12  ;;  %s5290_s6 = smov 24  }
 0x1a8   : > { %v3876_v1 = vld [vmem:[%s5352_s21] sm:$0xff]   ;;  %v3877_v2 = vld [vmem:[%s5352_s21 + $0x8] sm:$0xff]   ;;  %3551 = vmatpush3.bf16.msra.mxu0 %v3881_v8  ;;  %s5353_s1 = sld [smem:[#allocation41_spill]]  ;;  %s5354_s27 = sld [smem:[#allocation52_spill]] }
 0x1a9   : > { %3533 = vmatpush3.bf16.msra.mxu1 %v3876_v1  ;;  %v4943_v3 = vld [vmem:[%s1024_s8] sm:$0xff]  ;;  %3566 = vmatprep.subr.mxu0 %v4407_v0  ;;  %s5355_s7 = smov 24   ;;  %s5362_s25 = sld [smem:[#allocation57_spill]] }
 0x1aa   : > { %3534 = vmatprep.subr.bf16.mxu1 %v4407_v0  ;;  %v1052_v5 = vpack.c.bf16 %v4943_v3, %v4943_v3 }
 0x1ac   : > { %3553 = vmatmul.mubr.msk.bf16.vlgmr.msra.gmra.mrb[0].mxu0 %vm1071_vm1, %v1052_v5 }
 0x1ad   : > { %3535 = vmatpush3.bf16.msra.mxu1 %v3877_v2  ;;  %3568 = vmatprep.mubr.msk.f32.mxu0 %vm4408_vm0, %v4407_v0 }
 0x1ae   : > { %3540 = vmatprep.subr.bf16.mxu1 %v4407_v0  ;;  %s1028_s29 = scalar_lea.vmem %s5353_s1, %s3390_s12  ;;  %s5357_s12 = sld [smem:[#allocation54_spill]] }
 0x1b0   : > { %3537 = vmatmul.mubr.msk.bf16.vlgmr.msra.gmra.mrb[0].mxu1 %vm1071_vm1, %v1052_v5 }
 0x1b1   : > { %3541 = vmatpush3.bf16.msra.mxu1 %v3878_v4  ;;  %3544 = vmatprep.mubr.msk.bf16.mxu1 %vm4408_vm0, %v4407_v0 }
 0x1b2   : > { %3542 = vmatprep.subr.bf16.mxu1 %v4407_v0 }
 0x1b5   : > { %3543 = vmatpush3.bf16.msra.mxu1 %v3879_v6 }
 0x1b6   : > { %3556 = vmatprep.subr.mxu1 %v4407_v0 }
 0x1b8   : > { %3545 = vmatmul.mubr.msk.bf16.vlgmr.msra.gmra.mrb[4].mxu1 %vm1071_vm1, %v1052_v5 }
 0x1b9   : > { %3558 = vmatprep.mubr.msk.f32.mxu1 %vm4408_vm0, %v4407_v0 }
 0x27f   : > { %v1226_v22 = vpop.f32.mrb[0].mxu0 }
 0x280   : > { %v3554_v23 = vpop.f32.mrb[1].mxu0  ;;  %v1227_v31 = vadd.f32 %v3400_v29, %v1226_v22  ;;  %v3883_v22 = vld [vmem:[#allocation11 + $0x8] sm:$0xff]  }
 0x281   : > { %v1229_v24 = vpop.f32.mrb[2].mxu0 }
 0x282   : > { %v3555_v25 = vpop.f32.mrb[3].mxu0 }
 0x283   : > { %v1109_v9 = vpop.f32.mrb[0].mxu1 }
 0x284   : > { %v3538_v10 = vpop.f32.mrb[1].mxu1  ;;  %v1110_v16 = vadd.f32 %v3392_v13, %v1109_v9 }
 0x285   : > { %v1112_v11 = vpop.f32.mrb[2].mxu1 }
 0x286   : > { %v3539_v12 = vpop.f32.mrb[3].mxu1  ;;  %v1115_v21 = vmul.f32 0.35355338, %v1110_v16 }
 0x28b   : > { %v1168_v15 = vpop.f32.mrb[4].mxu1 }
 0x28c   : > { %v1169_v17 = vadd.f32 %v3396_v14, %v1168_v15  ;;  %v3546_v18 = vpop.f32.mrb[5].mxu1 }
 0x28d   : > { %v1171_v19 = vpop.f32.mrb[6].mxu1 }
 0x28e   : > { %1242 = vrot.lane.b32.xlu1 %v1169_v17, %s4409_s26  ;;  %1240 = vrot.lane.b32.xlu0 %v1169_v17, %s4410_s9  ;;  %v3547_v20 = vpop.f32.mrb[7].mxu1 }
 0x28f   : > { %3557 = vmatpush3.xpose.msk.msra.mxu1 %vm1256_vm2, %v1169_v17 }
 0x290   : > { %3561 = vmatprep.subr.mxu1 %v4407_v0 }
 0x292   : > { %3559 = vmatmul.mubr.msk.f32.vlgmr.msra.gmra.mrb[8].mxu1 %vm1256_vm2, %v1115_v21  ;;  %1244 = vrot.lane.b32.xlu1 %v1169_v17, %s4411_s10 }
 0x293   : > { %1233 = vrot.lane.b32.xlu0 %v1115_v21, %s4410_s9  ;;  %3563 = vmatprep.mubr.msk.f32.mxu1 %vm4408_vm0, %v4407_v0 }
 0x296   : > { %1237 = vrot.lane.b32.xlu1 %v1115_v21, %s4411_s10 }
 0x297   : > { %1235 = vrot.lane.b32.xlu0 %v1115_v21, %s4409_s26  ;;  %v3882_v21 = vld [vmem:[#allocation11] sm:$0xff]  }
 0x300   : > { %v1243_v26 = vpop.permute.xlu1 %1242  ;;  %v1241_v27 = vpop.permute.xlu0 %1240 }
 0x301   : > { %3562 = vmatpush3.xpose.msk.msra.mxu1 %vm1256_vm2, %v1241_v27  ;;  %3567 = vmatpush3.xpose.msk.msra.mxu0 %vm1256_vm2, %v1243_v26 }
 0x302   : > { %3571 = vmatprep.subr.mxu1 %v4407_v0  ;;  %3576 = vmatprep.subr.mxu0 %v4407_v0 }
 0x304   : > { %v1245_v28 = vpop.permute.xlu1 %1244 }
 0x305   : > { %v1234_v30 = vpop.permute.xlu0 %1233 }
 0x306   : > { %3564 = vmatmul.mubr.msk.f32.vlgmr.msra.gmra.mrb[10].mxu1 %vm1256_vm2, %v1234_v30 }
 0x307   : > { %3572 = vmatpush3.xpose.msk.msra.mxu1 %vm1256_vm2, %v1245_v28  ;;  %3573 = vmatprep.mubr.msk.f32.mxu1 %vm4408_vm0, %v4407_v0 }
 0x308   : > { %v1238_v32 = vpop.permute.xlu1 %1237  ;;  %3581 = vmatprep.subr.mxu1 %v4407_v0 }
 0x309   : > { %v1236_v33 = vpop.permute.xlu0 %1235 }
 0x30a   : > { %3569 = vmatmul.mubr.msk.f32.vlgmr.msra.gmra.mrb[4].mxu0 %vm1256_vm2, %v1236_v33  ;;  %3574 = vmatmul.mubr.msk.f32.vlgmr.msra.gmra.mrb[12].mxu1 %vm1256_vm2, %v1238_v32 }
 0x30b   : > { %3577 = vmatpush3.msra.mxu0 %v1227_v31  ;;  %3578 = vmatprep.mubr.msk.f32.mxu0 %vm4408_vm0, %v4407_v0 }
 0x30c   : > { %3586 = vmatprep.subr.mxu0 %v4407_v0  ;;  %3583 = vmatprep.mubr.msk.f32.mxu1 %vm4408_vm0, %v4407_v0 }
 0x365   : > { %v1327_v34 = vpop.f32.mrb[8].mxu1 }
 0x366   : > { %v3560_v35 = vpop.f32.mrb[9].mxu1  ;;  %v1553_v36 = vsel %vm1256_vm2, %v1327_v34, -inf }
 0x367   : > { %1554 = vmax.xlane.f32.xlu0 %v1553_v36  ;;  %v3416_v36 = vld [vmem:[#allocation13] ss:$0 sm:$0xff] }
 0x3d9   : > { %v1401_v37 = vpop.f32.mrb[10].mxu1 }
 0x3da   : > { %v3565_v38 = vpop.f32.mrb[11].mxu1  ;;  %v1556_v39 = vsel %vm1256_vm2, %v1401_v37, -inf }
 0x3db   : > { %1557 = vmax.xlane.f32.xlu1 %v1556_v39 }
 0x3dd   : > { %v1475_v40 = vpop.f32.mrb[4].mxu0  ;;  %v1549_v41 = vpop.f32.mrb[12].mxu1 }
 0x3de   : > { %v3570_v42 = vpop.f32.mrb[5].mxu0  ;;  %v3575_v43 = vpop.f32.mrb[13].mxu1  ;;  %v1559_v44 = vsel %vm1256_vm2, %v1475_v40, -inf  ;;  %v1562_v45 = vsel %vm1256_vm2, %v1549_v41, -inf }
 0x3df   : > { %1560 = vmax.xlane.f32.xlu0 %v1559_v44 }
 0x3e3   : > { %1563 = vmax.xlane.f32.xlu0 %v1562_v45 }
 0x3ec   : > { %1247 = vrot.lane.b32.xlu1 %v1227_v31, %s4410_s9 }
 0x3f4   : > { %v1555_v46 = vpop.xlane.xlu0 %1554 }
 0x3f5   : > { %v1565_v47 = vsub.f32 %v1327_v34, %v1555_v46 }
 0x3f7   : > { %v1569_v48 = vmul.f32 1.442695, %v1565_v47 }
 0x3f9   : > { %3898 = vpow2.f32 %v1569_v48 }
 0x403   : > { %v3899_v49 = vpop.eup %3898 }
 0x404   : > { %v1577_v50 = vsel %vm1256_vm2, %v3899_v49, 0.0 }
 0x410   : > { %1578 = vadd.xlane.f32.xlu1 %v1577_v50  ;;  %v1031_v50 = vld [vmem:[%s1028_s29] sm:$0xff]  ;;  %s5361_s29 = sld [smem:[#allocation56_spill]] }
 0x468   : > { %v1558_v51 = vpop.xlane.xlu1 %1557 }
 0x469   : > { %v1566_v52 = vsub.f32 %v1401_v37, %v1558_v51  ;;  %v2082_v51 = vpack.c.bf16 %v1031_v50, %v1031_v50 }
 0x46b   : > { %v1571_v53 = vmul.f32 1.442695, %v1566_v52  ;;  %v3886_v52 = vld [vmem:[%s5354_s27] sm:$0xff]  }
 0x46c   : > { %v1561_v54 = vpop.xlane.xlu0 %1560  ;;  %v1248_v55 = vpop.permute.xlu1 %1247 }
 0x46d   : > { %3900 = vpow2.f32 %v1571_v53  ;;  %v1567_v56 = vsub.f32 %v1475_v40, %v1561_v54  ;;  %3582 = vmatpush3.msra.mxu1 %v1248_v55  ;;  %v3887_v53 = vld [vmem:[%s5354_s27 + $0x8] sm:$0xff]  }
 0x46e   : > { %3591 = vmatprep.subr.mxu1 %v4407_v0 }
 0x46f   : > { %v1573_v57 = vmul.f32 1.442695, %v1567_v56 }
 0x470   : > { %v1564_v58 = vpop.xlane.xlu0 %1563 }
 0x471   : > { %3902 = vpow2.f32 %v1573_v57  ;;  %v1568_v59 = vsub.f32 %v1549_v41, %v1564_v58  ;;  %v3420_v58 = vld [vmem:[#allocation14] ss:$0 sm:$0xff] }
 0x473   : > { %v1575_v60 = vmul.f32 1.442695, %v1568_v59 }
 0x475   : > { %3904 = vpow2.f32 %v1575_v60  ;;  %v3421_v60 = vld [vmem:[#allocation16] ss:$0 sm:$0xff] }
 0x477   : > { %v3901_v61 = vpop.eup %3900 }
 0x478   : > { %v1580_v62 = vsel %vm1256_vm2, %v3901_v61, 0.0 }
 0x479   : > { %1581 = vadd.xlane.f32.xlu0 %v1580_v62 }
 0x47b   : > { %v3903_v63 = vpop.eup %3902 }
 0x47c   : > { %v1583_v1 = vsel %vm1256_vm2, %v3903_v63, 0.0 }
 0x47d   : > { %1584 = vadd.xlane.f32.xlu1 %v1583_v1  ;;  %v3426_v1 = vld [vmem:[#allocation19] ss:$0 sm:$0xff] }
 0x47f   : > { %v3905_v2 = vpop.eup %3904 }
 0x480   : > { %v1586_v4 = vsel %vm1256_vm2, %v3905_v2, 0.0 }
 0x481   : > { %1587 = vadd.xlane.f32.xlu0 %v1586_v4 }
 0x48e   : > { %1253 = vrot.lane.b32.xlu1 %v1227_v31, %s4411_s10 }
 0x497   : > { %1250 = vrot.lane.b32.xlu0 %v1227_v31, %s4409_s26 }
 0x49d   : > { %v1579_v5 = vpop.xlane.xlu1 %1578 }
 0x49e   : > { %3906 = vrcp.f32 %v1579_v5 }
 0x4a8   : > { %v3907_v6 = vpop.eup %3906 }
 0x4a9   : > { %v1593_v7 = vmul.f32 %v3907_v6, %v3899_v49  ;;  %v3884_v49 = vld [vmem:[%s5246_s14] sm:$0xff]  }
 0x4ab   : > { %3579 = vmatmul.mubr.msk.f32.vlgmr.msra.gmra.mrb[6].mxu0 %vm1256_vm2, %v1593_v7 }
 0x4ac   : > { %3588 = vmatprep.mubr.msk.f32.mxu0 %vm4408_vm0, %v4407_v0 }
 0x506   : > { %v1582_v8 = vpop.xlane.xlu0 %1581 }
 0x507   : > { %3908 = vrcp.f32 %v1582_v8  ;;  %v3888_v8 = vld [vmem:[#allocation20] sm:$0xff]  }
 0x50a   : > { %v1585_v9 = vpop.xlane.xlu1 %1584 }
 0x50b   : > { %3910 = vrcp.f32 %v1585_v9  ;;  %v3889_v9 = vld [vmem:[#allocation20 + $0x8] sm:$0xff]  }
 0x50e   : > { %v1588_v10 = vpop.xlane.xlu0 %1587  ;;  %v1254_v14 = vpop.permute.xlu1 %1253 }
 0x50f   : > { %3912 = vrcp.f32 %v1588_v10 }
 0x511   : > { %v3909_v11 = vpop.eup %3908 }
 0x512   : > { %v1594_v12 = vmul.f32 %v3909_v11, %v3901_v61  ;;  %v1251_v13 = vpop.permute.xlu0 %1250  ;;  %v3422_v11 = vld [vmem:[#allocation17] ss:$0 sm:$0xff] }
 0x513   : > { %3587 = vmatpush3.msra.mxu0 %v1251_v13 }
 0x514   : > { %3584 = vmatmul.mubr.msk.f32.vlgmr.msra.gmra.mrb[14].mxu1 %vm1256_vm2, %v1594_v12  ;;  %3596 = vmatprep.subr.bf16.mxu0 %v4407_v0 }
 0x515   : > { %v3911_v15 = vpop.eup %3910  ;;  %3592 = vmatpush3.msra.mxu1 %v1254_v14  ;;  %3593 = vmatprep.mubr.msk.f32.mxu1 %vm4408_vm0, %v4407_v0 }
 0x516   : > { %v1595_v16 = vmul.f32 %v3911_v15, %v3903_v63  ;;  %3604 = vmatprep.subr.bf16.mxu1 %v4407_v0 }
 0x518   : > { %3589 = vmatmul.mubr.msk.f32.vlgmr.msra.gmra.mrb[8].mxu0 %vm1256_vm2, %v1595_v16 }
 0x519   : > { %v3913_v17 = vpop.eup %3912  ;;  %3600 = vmatprep.mubr.msk.bf16.mxu0 %vm4408_vm0, %v4407_v0  ;;  %3597 = vmatpush3.bf16.msra.mxu0 %v3882_v21 }
 0x51a   : > { %v1596_v18 = vmul.f32 %v3913_v17, %v3905_v2  ;;  %3598 = vmatprep.subr.bf16.mxu0 %v4407_v0 }
 0x51c   : > { %3594 = vmatmul.mubr.msk.f32.vlgmr.msra.gmra.mrb[16].mxu1 %vm1256_vm2, %v1596_v18 }
 0x51d   : > { %3608 = vmatprep.mubr.msk.bf16.mxu1 %vm4408_vm0, %v4407_v0  ;;  %3599 = vmatpush3.bf16.msra.mxu0 %v3883_v22 }
 0x51e   : > { %3612 = vmatprep.subr.bf16.mxu0 %v4407_v0  ;;  %3605 = vmatpush3.bf16.msra.mxu1 %v3886_v52 }
 0x51f   : > { %3606 = vmatprep.subr.bf16.mxu1 %v4407_v0 }
 0x522   : > { %3607 = vmatpush3.bf16.msra.mxu1 %v3887_v53 }
 0x523   : > { %3620 = vmatprep.subr.bf16.mxu1 %v4407_v0 }
 0x57e   : > { %v1666_v19 = vpop.f32.mrb[6].mxu0 }
 0x57f   : > { %v3580_v20 = vpop.f32.mrb[7].mxu0 }
 0x5e7   : > { %v1739_v23 = vpop.f32.mrb[14].mxu1 }
 0x5e8   : > { %1890 = vrot.lane.b32.xlu1 %v1739_v23, %s4412_s5  ;;  %v3585_v24 = vpop.f32.mrb[15].mxu1 }
 0x5e9   : > { %v3430_v24 = vld [vmem:[#allocation22] ss:$0 sm:$0xff] }
 0x5eb   : > { %v1812_v25 = vpop.f32.mrb[8].mxu0 }
 0x5ec   : > { %1894 = vrot.lane.b32.xlu0 %v1812_v25, %s4413_s23  ;;  %v3590_v26 = vpop.f32.mrb[9].mxu0 }
 0x5ef   : > { %v1885_v27 = vpop.f32.mrb[16].mxu1 }
 0x5f0   : > { %1898 = vrot.lane.b32.xlu1 %v1885_v27, %s5290_s6  ;;  %v3595_v28 = vpop.f32.mrb[17].mxu1 }
 0x65a   : > { %v1891_v29 = vpop.permute.xlu1 %1890 }
 0x65b   : > { %v1901_v31 = vsel %vm1256_vm2, %v1666_v19, %v1891_v29 }
 0x65e   : > { %v1895_v30 = vpop.permute.xlu0 %1894 }
 0x65f   : > { %v1903_v32 = vsel %vm1902_vm3, %v1901_v31, %v1895_v30 }
 0x662   : > { %v1899_v33 = vpop.permute.xlu1 %1898 }
 0x663   : > { %v1905_v34 = vsel %vm1904_vm4, %v1903_v32, %v1899_v33 }
 0x664   : > { %v1906_v35 = vpack.c.bf16 %v1905_v34, %v1905_v34 }
 0x666   : > { %3601 = vmatmul.mubr.msk.bf16.vlgmr.msra.gmra.mrb[12].mxu0 %vm1071_vm1, %v1906_v35 }
 0x667   : > { %3616 = vmatprep.mubr.msk.bf16.mxu0 %vm4408_vm0, %v4407_v0  ;;  %3613 = vmatpush3.bf16.msra.mxu0 %v3884_v49 }
 0x668   : > { %3614 = vmatprep.subr.bf16.mxu0 %v4407_v0 }
 0x739   : > { %v1962_v37 = vpop.f32.mrb[12].mxu0 }
 0x73a   : > { %v1963_v38 = vadd.f32 %v3416_v36, %v1962_v37  ;;  %v3602_v39 = vpop.f32.mrb[13].mxu0 }
 0x73b   : > { %v1965_v40 = vpop.f32.mrb[14].mxu0 }
 0x73c   : > { %v3603_v41 = vpop.f32.mrb[15].mxu0  ;;  %v1968_v42 = vadd.f32 %v1963_v38, %v4943_v3  ;;  %v3885_v3 = vld [vmem:[%s5246_s14 + $0x8] sm:$0xff]  }
 0x73d   : > { %3615 = vmatpush3.bf16.msra.mxu0 %v3885_v3 }
 0x73e   : > { %v1971_v43 = vsel %vm1071_vm1, %v1968_v42, 0.0  ;;  %3628 = vmatprep.subr.mxu0 %v4407_v0 }
 0x73f   : > { %1972 = vadd.xlane.f32.xlu0 %v1971_v43 }
 0x740   : > { %3617 = vmatmul.mubr.msk.bf16.vlgmr.msra.gmra.mrb[16].mxu0 %vm1071_vm1, %v2082_v51 }
 0x741   : > { %3630 = vmatprep.mubr.msk.f32.mxu0 %vm4408_vm0, %v4407_v0 }
 0x7cc   : > { %v1973_v44 = vpop.xlane.xlu0 %1972 }
 0x7cd   : > { %v1975_v45 = vmul.f32 0.03125, %v1973_v44 }
 0x7cf   : > { %v1976_v46 = vsub.f32 %v1968_v42, %v1975_v45 }
 0x7d1   : > { %v1977_v47 = vmul.f32 %v1976_v46, %v1976_v46 }
 0x7d3   : > { %v1978_v48 = vsel %vm1071_vm1, %v1977_v47, 0.0 }
 0x7d4   : > { %1979 = vadd.xlane.f32.xlu1 %v1978_v48 }
 0x813   : > { %v2138_v2 = vpop.f32.mrb[16].mxu0 }
 0x814   : > { %v2139_v4 = vadd.f32 %v3426_v1, %v2138_v2  ;;  %v3618_v5 = vpop.f32.mrb[17].mxu0 }
 0x815   : > { %v2141_v6 = vpop.f32.mrb[18].mxu0 }
 0x816   : > { %2210 = vrot.lane.b32.xlu0 %v2139_v4, %s4410_s9  ;;  %v3619_v7 = vpop.f32.mrb[19].mxu0  ;;  %2214 = vrot.lane.b32.xlu1 %v2139_v4, %s4411_s10 }
 0x817   : > { %3629 = vmatpush3.xpose.msk.msra.mxu0 %vm1256_vm2, %v2139_v4 }
 0x818   : > { %3638 = vmatprep.subr.mxu0 %v4407_v0 }
 0x81a   : > { %2212 = vrot.lane.b32.xlu0 %v2139_v4, %s4409_s26 }
 0x861   : > { %v1980_v54 = vpop.xlane.xlu1 %1979 }
 0x862   : > { %v1981_v55 = vmul.f32 0.03125, %v1980_v54 }
 0x864   : > { %v1982_v56 = vadd.f32 1e-05, %v1981_v55 }
 0x866   : > { %3914 = vrsqrt.f32 %v1982_v56 }
 0x870   : > { %v3915_v57 = vpop.eup %3914 }
 0x871   : > { %v1984_v59 = vmul.f32 %v3915_v57, %v1976_v46 }
 0x873   : > { %v1991_v61 = vmul.f32 %v3420_v58, %v1984_v59 }
 0x875   : > { %v5053_v62 = vadd.f32 %v3421_v60, %v1991_v61 }
 0x877   : > { %v2019_v63 = vpack.c.bf16 %v5053_v62, %v5053_v62 }
 0x879   : > { %3609 = vmatmul.mubr.msk.bf16.vlgmr.msra.gmra.mrb[20].mxu1 %vm1071_vm1, %v2019_v63 }
 0x87a   : > { %3624 = vmatprep.mubr.msk.bf16.mxu1 %vm4408_vm0, %v4407_v0  ;;  %3621 = vmatpush3.bf16.msra.mxu1 %v3888_v8 }
 0x87b   : > { %3622 = vmatprep.subr.bf16.mxu1 %v4407_v0 }
 0x87e   : > { %3623 = vmatpush3.bf16.msra.mxu1 %v3889_v9 }
 0x87f   : > { %3633 = vmatprep.subr.mxu1 %v4407_v0 }
 0x881   : > { %3625 = vmatmul.mubr.msk.bf16.vlgmr.msra.gmra.mrb[24].mxu1 %vm1071_vm1, %v2082_v51 }
 0x882   : > { %3635 = vmatprep.mubr.msk.f32.mxu1 %vm4408_vm0, %v4407_v0 }
 0x888   : > { %v2211_v10 = vpop.permute.xlu0 %2210  ;;  %v2215_v23 = vpop.permute.xlu1 %2214 }
 0x889   : > { %3634 = vmatpush3.xpose.msk.msra.mxu1 %vm1256_vm2, %v2211_v10 }
 0x88a   : > { %3643 = vmatprep.subr.mxu1 %v4407_v0 }
 0x88c   : > { %v2213_v18 = vpop.permute.xlu0 %2212 }
 0x94c   : > { %v2075_v12 = vpop.f32.mrb[20].mxu1 }
 0x94d   : > { %v2076_v13 = vadd.f32 %v3422_v11, %v2075_v12  ;;  %v3610_v14 = vpop.f32.mrb[21].mxu1 }
 0x94e   : > { %v2078_v15 = vpop.f32.mrb[22].mxu1 }
 0x94f   : > { %v2081_v16 = vmul.f32 0.35355338, %v2076_v13  ;;  %v3611_v17 = vpop.f32.mrb[23].mxu1 }
 0x950   : > { %v3891_v17 = vld [vmem:[%s5250_s18 + $0x8] sm:$0xff]  }
 0x951   : > { %2205 = vrot.lane.b32.xlu0 %v2081_v16, %s4409_s26  ;;  %2203 = vrot.lane.b32.xlu1 %v2081_v16, %s4410_s9 }
 0x952   : > { %3631 = vmatmul.mubr.msk.f32.vlgmr.msra.gmra.mrb[10].mxu0 %vm1256_vm2, %v2081_v16 }
 0x953   : > { %3639 = vmatpush3.xpose.msk.msra.mxu0 %vm1256_vm2, %v2213_v18  ;;  %3640 = vmatprep.mubr.msk.f32.mxu0 %vm4408_vm0, %v4407_v0 }
 0x954   : > { %3648 = vmatprep.subr.mxu0 %v4407_v0  ;;  %v2196_v19 = vpop.f32.mrb[24].mxu1 }
 0x955   : > { %2207 = vrot.lane.b32.xlu1 %v2081_v16, %s4411_s10  ;;  %v3626_v20 = vpop.f32.mrb[25].mxu1  ;;  %v2197_v25 = vadd.f32 %v3430_v24, %v2196_v19  ;;  %v3890_v16 = vld [vmem:[%s5250_s18] sm:$0xff]  }
 0x956   : > { %v2199_v21 = vpop.f32.mrb[26].mxu1 }
 0x957   : > { %v3627_v22 = vpop.f32.mrb[27].mxu1 }
 0x9c3   : > { %v2206_v26 = vpop.permute.xlu0 %2205  ;;  %v2204_v27 = vpop.permute.xlu1 %2203 }
 0x9c4   : > { %3636 = vmatmul.mubr.msk.f32.vlgmr.msra.gmra.mrb[18].mxu1 %vm1256_vm2, %v2204_v27  ;;  %3641 = vmatmul.mubr.msk.f32.vlgmr.msra.gmra.mrb[20].mxu0 %vm1256_vm2, %v2206_v26 }
 0x9c5   : > { %3644 = vmatpush3.xpose.msk.msra.mxu1 %vm1256_vm2, %v2215_v23  ;;  %3645 = vmatprep.mubr.msk.f32.mxu1 %vm4408_vm0, %v4407_v0 }
 0x9c6   : > { %3649 = vmatpush3.msra.mxu0 %v2197_v25  ;;  %3653 = vmatprep.subr.mxu1 %v4407_v0 }
 0x9c7   : > { %v2208_v28 = vpop.permute.xlu1 %2207  ;;  %3650 = vmatprep.mubr.msk.f32.mxu0 %vm4408_vm0, %v4407_v0  ;;  %3658 = vmatprep.subr.mxu0 %v4407_v0 }
 0x9c8   : > { %3646 = vmatmul.mubr.msk.f32.vlgmr.msra.gmra.mrb[28].mxu1 %vm1256_vm2, %v2208_v28 }
 0x9c9   : > { %3655 = vmatprep.mubr.msk.f32.mxu1 %vm4408_vm0, %v4407_v0 }
 0xa25   : > { %v2296_v29 = vpop.f32.mrb[10].mxu0 }
 0xa26   : > { %v3632_v30 = vpop.f32.mrb[11].mxu0  ;;  %v2522_v31 = vsel %vm1256_vm2, %v2296_v29, -inf }
 0xa27   : > { %2523 = vmax.xlane.f32.xlu0 %v2522_v31  ;;  %v3446_v31 = vld [vmem:[%s5251_s19] ss:$0 sm:$0xff] }
 0xa97   : > { %v2370_v32 = vpop.f32.mrb[18].mxu1  ;;  %v2444_v33 = vpop.f32.mrb[20].mxu0 }
 0xa98   : > { %v3637_v34 = vpop.f32.mrb[19].mxu1  ;;  %v3642_v35 = vpop.f32.mrb[21].mxu0  ;;  %v2528_v36 = vsel %vm1256_vm2, %v2444_v33, -inf  ;;  %v2525_v37 = vsel %vm1256_vm2, %v2370_v32, -inf }
 0xa99   : > { %2529 = vmax.xlane.f32.xlu0 %v2528_v36  ;;  %2526 = vmax.xlane.f32.xlu1 %v2525_v37 }
 0xa9b   : > { %v2518_v38 = vpop.f32.mrb[28].mxu1 }
 0xa9c   : > { %v3647_v39 = vpop.f32.mrb[29].mxu1  ;;  %v2531_v40 = vsel %vm1256_vm2, %v2518_v38, -inf }
 0xa9d   : > { %2532 = vmax.xlane.f32.xlu0 %v2531_v40 }
 0xaaa   : > { %2217 = vrot.lane.b32.xlu1 %v2197_v25, %s4410_s9  ;;  %s5358_s9 = sld [smem:[#allocation55_spill]] }
 0xab4   : > { %v2524_v41 = vpop.xlane.xlu0 %2523 }
 0xab5   : > { %v2534_v42 = vsub.f32 %v2296_v29, %v2524_v41 }
 0xab7   : > { %v2538_v43 = vmul.f32 1.442695, %v2534_v42 }
 0xab9   : > { %3916 = vpow2.f32 %v2538_v43 }
 0xac3   : > { %v3917_v44 = vpop.eup %3916 }
 0xac4   : > { %v2546_v45 = vsel %vm1256_vm2, %v3917_v44, 0.0 }
 0xace   : > { %2547 = vadd.xlane.f32.xlu1 %v2546_v45  ;;  %v3893_v45 = vld [vmem:[%s5254_s22 + $0x8] sm:$0xff]  }
 0xb26   : > { %v2530_v46 = vpop.xlane.xlu0 %2529  ;;  %v2527_v47 = vpop.xlane.xlu1 %2526 }
 0xb27   : > { %v2536_v48 = vsub.f32 %v2444_v33, %v2530_v46  ;;  %v2535_v49 = vsub.f32 %v2370_v32, %v2527_v47  ;;  %v3895_v46 = vld [vmem:[%s5256_s24 + $0x8] sm:$0xff]  }
 0xb29   : > { %v2542_v3 = vmul.f32 1.442695, %v2536_v48  ;;  %v2540_v50 = vmul.f32 1.442695, %v2535_v49 }
 0xb2a   : > { %v2218_v51 = vpop.permute.xlu1 %2217  ;;  %v2533_v52 = vpop.xlane.xlu0 %2532 }
 0xb2b   : > { %3918 = vpow2.f32 %v2542_v3  ;;  %v2537_v53 = vsub.f32 %v2518_v38, %v2533_v52  ;;  %3654 = vmatpush3.msra.mxu1 %v2218_v51 }
 0xb2c   : > { %3920 = vpow2.f32 %v2540_v50  ;;  %3663 = vmatprep.subr.mxu1 %v4407_v0  ;;  %v3450_v50 = vld [vmem:[%s5252_s20] ss:$0 sm:$0xff] }
 0xb2d   : > { %v2544_v54 = vmul.f32 1.442695, %v2537_v53 }
 0xb2f   : > { %3922 = vpow2.f32 %v2544_v54 }
 0xb35   : > { %v3919_v55 = vpop.eup %3918 }
 0xb36   : > { %v3921_v56 = vpop.eup %3920  ;;  %v2552_v57 = vsel %vm1256_vm2, %v3919_v55, 0.0 }
 0xb37   : > { %2553 = vadd.xlane.f32.xlu1 %v2552_v57  ;;  %v2549_v58 = vsel %vm1256_vm2, %v3921_v56, 0.0  ;;  %v3897_v57 = vld [vmem:[%s5256_s24 + $0x18] sm:$0xff]  }
 0xb38   : > { %2550 = vadd.xlane.f32.xlu0 %v2549_v58  ;;  %v3452_v58 = vld [vmem:[%s5357_s12] ss:$0 sm:$0xff]  ;;  %s3465_s12 = sshll.u32 %s4582_s3, 7  ;;  %s4415_s3 = smov [#allocation23]  }
 0xb39   : > { %v3923_v59 = vpop.eup %3922 }
 0xb3a   : > { %v2555_v60 = vsel %vm1256_vm2, %v3923_v59, 0.0 }
 0xb3c   : > { %2556 = vadd.xlane.f32.xlu0 %v2555_v60 }
 0xb48   : > { %2223 = vrot.lane.b32.xlu1 %v2197_v25, %s4411_s10  ;;  %s5359_s10 = sld [smem:[#allocation33_spill]] }
 0xb4e   : > { %s1018_s6 = sand.u32 1, %s5359_s10   ;;  %s5363_s10 = sld [smem:[#allocation58_spill]] }
 0xb52   : > { %2220 = vrot.lane.b32.xlu0 %v2197_v25, %s4409_s26 }
 0xb54   : > { %s5189_s2 = scalar_lea.hbm %s5363_s10, %s3465_s12 }
 0xb5b   : > { %v2548_v61 = vpop.xlane.xlu1 %2547 }
 0xb5c   : > { %3924 = vrcp.f32 %v2548_v61 }
 0xb66   : > { %v3925_v63 = vpop.eup %3924 }
 0xb67   : > { %v2562_v1 = vmul.f32 %v3925_v63, %v3917_v44  ;;  %v3892_v44 = vld [vmem:[%s5254_s22] sm:$0xff]  }
 0xb69   : > { %3651 = vmatmul.mubr.msk.f32.vlgmr.msra.gmra.mrb[22].mxu0 %vm1256_vm2, %v2562_v1 }
 0xb6a   : > { %3660 = vmatprep.mubr.msk.f32.mxu0 %vm4408_vm0, %v4407_v0 }
 0xbc4   : > { %v2554_v2 = vpop.xlane.xlu1 %2553 }
 0xbc5   : > { %3926 = vrcp.f32 %v2554_v2  ;;  %v2551_v4 = vpop.xlane.xlu0 %2550 }
 0xbc6   : > { %3928 = vrcp.f32 %v2551_v4 }
 0xbc8   : > { %v2224_v11 = vpop.permute.xlu1 %2223 }
 0xbc9   : > { %v2557_v5 = vpop.xlane.xlu0 %2556 }
 0xbca   : > { %3930 = vrcp.f32 %v2557_v5 }
 0xbcd   : > { %v2221_v6 = vpop.permute.xlu0 %2220 }
 0xbce   : > { %3659 = vmatpush3.msra.mxu0 %v2221_v6 }
 0xbcf   : > { %v3927_v7 = vpop.eup %3926  ;;  %3668 = vmatprep.subr.bf16.mxu0 %v4407_v0 }
 0xbd0   : > { %v3929_v8 = vpop.eup %3928  ;;  %v2564_v9 = vmul.f32 %v3927_v7, %v3919_v55 }
 0xbd1   : > { %v2563_v10 = vmul.f32 %v3929_v8, %v3921_v56  ;;  %v3896_v56 = vld [vmem:[%s5256_s24 + $0x10] sm:$0xff]  }
 0xbd2   : > { %3661 = vmatmul.mubr.msk.f32.vlgmr.msra.gmra.mrb[24].mxu0 %vm1256_vm2, %v2564_v9 }
 0xbd3   : > { %3656 = vmatmul.mubr.msk.f32.vlgmr.msra.gmra.mrb[30].mxu1 %vm1256_vm2, %v2563_v10  ;;  %3672 = vmatprep.mubr.msk.bf16.mxu0 %vm4408_vm0, %v4407_v0 }
 0xbd4   : > { %v3931_v12 = vpop.eup %3930  ;;  %3664 = vmatpush3.msra.mxu1 %v2224_v11  ;;  %3665 = vmatprep.mubr.msk.f32.mxu1 %vm4408_vm0, %v4407_v0 }
 0xbd5   : > { %v2565_v13 = vmul.f32 %v3931_v12, %v3923_v59  ;;  %3676 = vmatprep.subr.bf16.mxu1 %v4407_v0  ;;  %3669 = vmatpush3.bf16.msra.mxu0 %v3890_v16 }
 0xbd6   : > { %3670 = vmatprep.subr.bf16.mxu0 %v4407_v0 }
 0xbd7   : > { %3666 = vmatmul.mubr.msk.f32.vlgmr.msra.gmra.mrb[32].mxu1 %vm1256_vm2, %v2565_v13 }
 0xbd8   : > { %3680 = vmatprep.mubr.msk.bf16.mxu1 %vm4408_vm0, %v4407_v0  ;;  %3677 = vmatpush3.bf16.msra.mxu1 %v3892_v44 }
 0xbd9   : > { %3671 = vmatpush3.bf16.msra.mxu0 %v3891_v17  ;;  %3678 = vmatprep.subr.bf16.mxu1 %v4407_v0 }
 0xbda   : > { %3684 = vmatprep.subr.bf16.mxu0 %v4407_v0 }
 0xbdc   : > { %3679 = vmatpush3.bf16.msra.mxu1 %v3893_v45 }
 0xc3c   : > { %v2635_v14 = vpop.f32.mrb[22].mxu0 }
 0xc3d   : > { %v3652_v15 = vpop.f32.mrb[23].mxu0 }
 0xca5   : > { %v2781_v18 = vpop.f32.mrb[24].mxu0 }
 0xca6   : > { %v2708_v19 = vpop.f32.mrb[30].mxu1  ;;  %2863 = vrot.lane.b32.xlu0 %v2781_v18, %s4413_s23  ;;  %v3662_v20 = vpop.f32.mrb[25].mxu0  ;;  %s3149_s23 = scalar_lea.sflag [#allocation4], %s1018_s6 }
 0xca7   : > { %2859 = vrot.lane.b32.xlu1 %v2708_v19, %s4412_s5  ;;  %v3657_v21 = vpop.f32.mrb[31].mxu1  ;;  %s5356_s5 = sld [smem:[#allocation53_spill]] }
 0xca8   : > { %v3462_v21 = vld [vmem:[%s5361_s29] ss:$0 sm:$0xff] }
 0xcaa   : > { %v2854_v22 = vpop.f32.mrb[32].mxu1 }
 0xcab   : > { %2867 = vrot.lane.b32.xlu1 %v2854_v22, %s5355_s7  ;;  %v3667_v23 = vpop.f32.mrb[33].mxu1  ;;  %s3389_s7 = sshll.u32 %s1018_s6, 3 }
 0xcac   : > { %v3463_v23 = vld [vmem:[%s5362_s25] ss:$0 sm:$0xff]  ;;  %s1020_s8 = scalar_lea.vmem [#allocation23], %s3389_s7  ;;  %s4304_s7 = sshll.u32 %s4415_s3, 4  ;;  %s4305_s7 = int_to_ptr.vmem [resolvable:$false] %s4304_s7 }
 0xcad   : > { %v3451_v52 = vld [vmem:[%s5356_s5] ss:$0 sm:$0xff]  ;;  %s5360_s5 = sld [smem:[#allocation38_spill]]  ;;  %s3162_s26 = sshll.u32 %s1020_s8, 4  ;;  %s5191_s26 = int_to_ptr.vmem [resolvable:$true] %s3162_s26 }
 0xcae   : > { %s4300_s1 = scalar_lea.vmem %s5191_s26, 128  ;;  %s4306_s29 = scalar_lea.vmem %s4305_s7, 256 }
 0xcaf   : > { %p4301_p0 = scmp.ne.s32.totalorder %s5191_s26, %s4300_s1  ;;  %p4307_p12 = scmp.lt.s32.totalorder %s5191_s26, %s4305_s7 }
 0xcb0   : > { %p4308_p7 = scmp.lt.s32.totalorder %s4306_s29, %s4300_s1 }
 0xcb2   : > { %p4309_p8 = por %p4308_p7, %p4307_p12 }
 0xcb3   : > { %p5364_p2 = scmp.ne.s32.totalorder %s5360_s5, 0 }
 0xcb5   : > { %p4302_p3 = pnand %p4301_p0, %p5364_p2 }
 0xcb7   : > { %p4303_p4 = pneg %p4302_p3 }
 0xcb9   : > { %p4310_p11 = pnand %p4309_p8, %p4303_p4 }
 0xd18   : > { %v2864_v25 = vpop.permute.xlu0 %2863 }
 0xd19   : > { %v2860_v24 = vpop.permute.xlu1 %2859 }
 0xd1a   : > { %v2870_v26 = vsel %vm1256_vm2, %v2635_v14, %v2860_v24 }
 0xd1b   : > { %v2871_v27 = vsel %vm1902_vm3, %v2870_v26, %v2864_v25 }
 0xd1d   : > { %v2868_v28 = vpop.permute.xlu1 %2867 }
 0xd1e   : > { %v2872_v29 = vsel %vm1904_vm4, %v2871_v27, %v2868_v28 }
 0xd1f   : > { %v2873_v30 = vpack.c.bf16 %v2872_v29, %v2872_v29 }
 0xd21   : > { %3673 = vmatmul.mubr.msk.bf16.vlgmr.msra.gmra.mrb[28].mxu0 %vm1071_vm1, %v2873_v30 }
 0xd22   : > { %3692 = vmatprep.mubr.msk.bf16.mxu0 %vm4408_vm0, %v4407_v0 }
 0xdf4   : > { %v2929_v32 = vpop.f32.mrb[28].mxu0 }
 0xdf5   : > { %v2930_v33 = vadd.f32 %v3446_v31, %v2929_v32  ;;  %v3674_v34 = vpop.f32.mrb[29].mxu0 }
 0xdf6   : > { %v2932_v35 = vpop.f32.mrb[30].mxu0 }
 0xdf7   : > { %v3675_v36 = vpop.f32.mrb[31].mxu0  ;;  %v2935_v37 = vadd.f32 %v2930_v33, %v5053_v62  ;;  %v3894_v62 = vld [vmem:[%s5256_s24] sm:$0xff]  }
 0xdf8   : > { %3685 = vmatpush3.bf16.msra.mxu0 %v3894_v62 }
 0xdf9   : > { %v2938_v38 = vsel %vm1071_vm1, %v2935_v37, 0.0  ;;  %3686 = vmatprep.subr.bf16.mxu0 %v4407_v0 }
 0xdfa   : > { %2939 = vadd.xlane.f32.xlu0 %v2938_v38 }
 0xdfc   : > { %3687 = vmatpush3.bf16.msra.mxu0 %v3895_v46 }
 0xdfd   : > { %3688 = vmatprep.subr.bf16.mxu0 %v4407_v0 }
 0xe00   : > { %3689 = vmatpush3.bf16.msra.mxu0 %v3896_v56 }
 0xe01   : > { %3690 = vmatprep.subr.bf16.mxu0 %v4407_v0  ;;  %v3456_v0 = vld [vmem:[%s5358_s9] ss:$0 sm:$0xff] }
 0xe04   : > { %3691 = vmatpush3.bf16.msra.mxu0 %v3897_v57 }
 0xe87   : > { %v2940_v39 = vpop.xlane.xlu0 %2939 }
 0xe88   : > { %v2941_v40 = vmul.f32 0.03125, %v2940_v39 }
 0xe8a   : > { %v2942_v41 = vsub.f32 %v2935_v37, %v2941_v40 }
 0xe8c   : > { %v2943_v42 = vmul.f32 %v2942_v41, %v2942_v41 }
 0xe8e   : > { %v2944_v43 = vsel %vm1071_vm1, %v2943_v42, 0.0 }
 0xe8f   : > { %2945 = vadd.xlane.f32.xlu1 %v2944_v43 }
 0xf1c   : > { %v2946_v47 = vpop.xlane.xlu1 %2945 }
 0xf1d   : > { %v2947_v48 = vmul.f32 0.03125, %v2946_v47 }
 0xf1f   : > { %v2948_v49 = vadd.f32 1e-05, %v2947_v48 }
 0xf21   : > { %3932 = vrsqrt.f32 %v2948_v49 }
 0xf2b   : > { %v3933_v3 = vpop.eup %3932 }
 0xf2c   : > { %v2950_v51 = vmul.f32 %v3933_v3, %v2942_v41 }
 0xf2e   : > { %v2957_v53 = vmul.f32 %v3450_v50, %v2950_v51 }
 0xf30   : > { %v2964_v54 = vadd.f32 %v3451_v52, %v2957_v53 }
 0xf32   : > { %v2969_v55 = vpack.c.bf16 %v2964_v54, %v2964_v54 }
 0xf34   : > { %3681 = vmatmul.mubr.msk.bf16.vlgmr.msra.gmra.mrb[36].mxu1 %vm1071_vm1, %v2969_v55 }
0x1007   : > { %v3026_v59 = vpop.f32.mrb[36].mxu1 }
0x1008   : > { %v3027_v60 = vadd.f32 %v3452_v58, %v3026_v59  ;;  %v3682_v61 = vpop.f32.mrb[37].mxu1 }
0x1009   : > { %v3029_v63 = vpop.f32.mrb[38].mxu1 }
0x100a   : > { %v3032_v1 = vmax.f32 %v3027_v60, 0.0  ;;  %v3683_v2 = vpop.f32.mrb[39].mxu1 }
0x100c   : > { %v3041_v4 = vpack.c.bf16 %v3032_v1, %v3032_v1 }
0x100e   : > { %3693 = vmatmul.mubr.msk.bf16.vlgmr.msra.gmra.mrb[32].mxu0 %vm3073_vm5, %v3041_v4 }
0x10e1   : > { %v3111_v5 = vpop.f32.mrb[32].mxu0 }
0x10e2   : > { %v3112_v6 = vadd.f32 %v3456_v0, %v3111_v5  ;;  %v3694_v7 = vpop.f32.mrb[33].mxu0 }
0x10e3   : > { %v3114_v8 = vpop.f32.mrb[34].mxu0 }
0x10e4   : > { %v3695_v9 = vpop.f32.mrb[35].mxu0  ;;  %v3117_v10 = vadd.f32 %v3112_v6, %v2964_v54 }
0x10e6   : > { %v3120_v11 = vsel %vm1071_vm1, %v3117_v10, 0.0 }
0x10e7   : > { %3121 = vadd.xlane.f32.xlu0 %v3120_v11 }
0x1174   : > { %v3122_v12 = vpop.xlane.xlu0 %3121 }
0x1175   : > { %v3123_v13 = vmul.f32 0.03125, %v3122_v12 }
0x1177   : > { %v3124_v14 = vsub.f32 %v3117_v10, %v3123_v13 }
0x1179   : > { %v3125_v15 = vmul.f32 %v3124_v14, %v3124_v14 }
0x117b   : > { %v3126_v16 = vsel %vm1071_vm1, %v3125_v15, 0.0 }
0x117c   : > { %3127 = vadd.xlane.f32.xlu0 %v3126_v16 }
0x1209   : > { %v3128_v17 = vpop.xlane.xlu0 %3127 }
0x120a   : > { %v3129_v18 = vmul.f32 0.03125, %v3128_v17 }
0x120c   : > { %v3130_v19 = vadd.f32 1e-05, %v3129_v18 }
0x120e   : > { %3934 = vrsqrt.f32 %v3130_v19 }
0x1218   : > { %v3935_v20 = vpop.eup %3934 }
0x1219   : > { %v3132_v22 = vmul.f32 %v3935_v20, %v3124_v14 }
0x121b   : > { %v3139_v24 = vmul.f32 %v3462_v21, %v3132_v22 }
0x121d   : > { %v3146_v25 = vadd.f32 %v3463_v23, %v3139_v24 }
0x121f   : > { %3147 = vst.msk [vmem:[%s1020_s8] sm:$0xff] %vm1071_vm1, %v3146_v25 }
0x1220   : > { %4313 = shalt.err (!%p4310_p11)
}
0x1221   : > { %s4314_s0 = scalar_lea.hbm %s5189_s2, 128  ;;  %s4318_s30 = scalar_lea.hbm %s5363_s10, 256 }
0x1222   : > { %p4315_p13 = scmp.ne.s32.totalorder %s5189_s2, %s4314_s0  ;;  %p4319_p9 = scmp.lt.u32.totalorder %s5189_s2, %s5363_s10 }
0x1223   : > { %p4320_p5 = scmp.lt.u32.totalorder %s4318_s30, %s4314_s0  ;;  %p4322_p0 = scmp.lt.u32.totalorder %s4314_s0, %s5189_s2 }
0x1224   : > { %p4316_p1 = pnand %p4315_p13, %p5364_p2 }
0x1225   : > { %p4321_p10 = por %p4320_p5, %p4319_p9 }
0x1226   : > { %p4317_p6 = pneg %p4316_p1 }
0x1227   : > { %p4323_p3 = por %p4322_p0, %p4321_p10 }
0x1229   : > { %p4324_p4 = pnand %p4323_p3, %p4317_p6 }
0x122b   : > { %4327 = shalt.err (!%p4324_p4)
}
0x122c   : > { %3748 = dma.vmem_to_hbm [thread:$0]  (%p5364_p2), %s5191_s26, 128, %s5189_s2, %s3149_s23  }
0x122d PF: > { %s5365_s8 = sld [smem:[#allocation35_spill]]  ;;  %s5366_s9 = sld [smem:[#allocation32_spill]] }
0x122e   : > { %s5367_s1 = sld [smem:[#allocation39_spill]] }
0x1233   : > { %p3820_p12 = scmp.ge.s32.totalorder %s5365_s8, 2  ;;  %s3174_s3 = sand.u32 1, %s5366_s9  }
0x1234   : > { %p5368_p7 = scmp.ne.s32.totalorder %s5367_s1, 0  ;;  %s3175_s7 = scalar_lea.sflag [#allocation4], %s3174_s3 }
0x1236   : > { %p3791_p8 = pnand %p3820_p12, %p5368_p7 }
0x1238   : > { %4373 = dma.done.wait (!%p3791_p8), %s3175_s7, 128  }
0x1239   : > { %4375 = vsyncadd (!%p3791_p8), %s3175_s7, 4294967168  ;;  %s5369_s30 = sld [smem:[#allocation36_spill]]  ;;  %s5370_s8 = sld [smem:[#allocation33_spill]] }
0x123a   : > { %s5371_s5 = sld [smem:[#allocation34_spill]]  ;;  %s5372_s9 = sld [smem:[#allocation37_spill]] }
0x123f   : > { %p45_p11 = scmp.ge.s32.totalorder %s5369_s30, 4  }
0x1241   :  { %47 = sbr.rel (!%p45_p11) target bundleno = 30 (0x1e), region = 223 }
0x1248   :  { %3180 = vsyncpa [#allocation3], 1 }
0x1249   :  { %3182 = vsyncpa [#allocation3 + $0x1], 1 }
0x124a   :  { %3183 = vsyncpa [#allocation6], 1 }
0x124b   :  { %3184 = vsyncpa [#allocation9], 1 }
0x124c   :  { %3185 = vsyncpa [#allocation12], 1 }
0x124d   :  { %3186 = vsyncpa [#allocation15], 1 }
0x124e   :  { %3187 = vsyncpa [#allocation18], 1 }
0x124f   :  { %3188 = vsyncpa [#allocation21], 1 }
0x1250   :  { %3189 = vsyncpa [#allocation4], 1 }
0x1251   :  { %3191 = vsyncpa [#allocation4 + $0x1], 1 }

</bundles_post_ra>
